<compile_context>
chip_gen: v6e
topology: v6e:2x2x1
jax: 0.10.0
libtpu: 0.0.40
codegen_flags: <defaults>
</compile_context>

<pallas_src>
import functools

import jax
import jax.numpy as jnp
from jax import lax
from jax.experimental import pallas as pl
from jax.experimental.pallas import tpu as pltpu


# ----------------------------------------------------------------------------
# Fused Pallas kernel: embeddings -> 2x bidirectional LSTM -> FC
# ----------------------------------------------------------------------------
def fused_lstm_kernel(x_ref,        # (T*Bp, E)  bf16 time-major flattened embeddings
                      w_ih0_ref,    # (E, 8H)    bf16, gate-major fused columns
                      b0_ref,       # (1, 8H)    f32,  b_ih + b_hh
                      whh0_ref,     # (2H, 8H)   bf16, block-structured recurrent weights
                      w_ih1_ref,    # (2H, 8H)   bf16, rows [:H]=l0 fwd out, [H:]=l0 bwd out
                      b1_ref,       # (1, 8H)    f32
                      whh1_ref,     # (2H, 8H)   bf16
                      fc_w_ref,     # (2H, O)    f32, rows [:H]=fwd final, [H:]=bwd final
                      fc_b_ref,     # (1, O)     f32
                      out_ref,      # (Bp, O)    f32
                      acc0_ref,     # VMEM scratch (T*Bp, 2H) f32: layer-0 outputs
                      *, T):
    Bp = out_ref.shape[0]
    H = whh0_ref.shape[0] // 2
    GG = 8 * H
    f32 = jnp.float32
    bf16 = jnp.bfloat16

    # Hoisted lane masks (gate-major fused packing: [i_f,i_b,f_f,f_b,o_f,o_b,g_f,g_b]).
    lane = lax.broadcasted_iota(jnp.int32, (Bp, GG), 1)
    sig_mask = lane < 6 * H               # i, f, o -> sigmoid ; g -> tanh
    fwd_mask = (lane % (2 * H)) < H       # lanes owned by the forward direction

    def step(pre_slab, t, h_cat, c_cat, whh_ref):
        """One fused fwd+bwd LSTM step (fwd processes time t, bwd time T-1-t)."""
        tb = T - 1 - t
        pre_f_rows = pre_slab[t * Bp:(t + 1) * Bp, :]     # (Bp, 8H) gates for time t
        pre_b_rows = pre_slab[tb * Bp:(tb + 1) * Bp, :]   # (Bp, 8H) gates for time tb
        pre = jnp.where(fwd_mask, pre_f_rows, pre_b_rows)
        # single MXU push per step: [h_fwd | h_bwd] @ block-structured W_hh
        gates = pre + jnp.dot(h_cat.astype(bf16), whh_ref[...],
                              preferred_element_type=f32)
        # single EUP pass: tanh(x) = 2*sigmoid(2x) - 1
        s = jax.nn.sigmoid(jnp.where(sig_mask, gates, 2.0 * gates))
        act = jnp.where(sig_mask, s, 2.0 * s - 1.0)
        i_g = act[:, 0 * H:2 * H]
        f_g = act[:, 2 * H:4 * H]
        o_g = act[:, 4 * H:6 * H]
        g_g = act[:, 6 * H:8 * H]
        c_new = f_g * c_cat + i_g * g_g
        h_new = o_g * jnp.tanh(c_new)
        return h_new, c_new

    # ---- layer 0: hoisted input projection over all T*Bp rows, both dirs ----
    pre0 = (jnp.dot(x_ref[...], w_ih0_ref[...], preferred_element_type=f32)
            + b0_ref[...])                                     # (T*Bp, 8H) f32

    zeros = jnp.zeros((Bp, 2 * H), f32)
    h_cat, c_cat = zeros, zeros
    for t in range(T):                      # fully unrolled, static indices
        tb = T - 1 - t
        h_cat, c_cat = step(pre0, t, h_cat, c_cat, whh0_ref)
        # layer-0 output at time t (fwd) / time tb (bwd); no zero-init needed,
        # every element of acc0 is written exactly once.
        acc0_ref[t * Bp:(t + 1) * Bp, :H] = h_cat[:, :H]
        acc0_ref[tb * Bp:(tb + 1) * Bp, H:] = h_cat[:, H:]

    # ---- layer 1: single hoisted projection of the merged layer-0 output ----
    pre1 = (jnp.dot(acc0_ref[...].astype(bf16), w_ih1_ref[...],
                    preferred_element_type=f32)
            + b1_ref[...])                                     # (T*Bp, 8H) f32

    h_cat, c_cat = zeros, zeros
    for t in range(T):
        h_cat, c_cat = step(pre1, t, h_cat, c_cat, whh1_ref)

    # ---- epilogue: h_cat == concat(hidden[-2], hidden[-1]); dropout = identity
    # TODO(synk): training-mode dropout (random mask + 2x scale) not implemented.
    out_ref[...] = (jnp.dot(h_cat, fc_w_ref[...], preferred_element_type=f32)
                    + fc_b_ref[...])


# ----------------------------------------------------------------------------
# Wrappers
# ----------------------------------------------------------------------------
def _fused_forward(x2d, params, *, T, B, Bp):
    H = params["whh0_blk"].shape[0] // 2
    O = params["fc_w"].shape[1]
    bf16 = jnp.bfloat16

    args = (x2d.astype(bf16),
            params["w_ih0"].astype(bf16), params["b0"], params["whh0_blk"].astype(bf16),
            params["w_ih1"].astype(bf16), params["b1"], params["whh1_blk"].astype(bf16),
            params["fc_w"], params["fc_b"])

    # vmem_limit_bytes sized from the actual footprint (args + scratch + the two
    # materialized (T*Bp, 8H) pre-gate slabs), with headroom.
    arg_bytes = sum(int(a.size) * a.dtype.itemsize for a in args)
    acc_bytes = T * Bp * 2 * H * 4
    pre_bytes = T * Bp * 8 * H * 4
    out_bytes = Bp * O * 4
    need = 2 * arg_bytes + out_bytes + acc_bytes + 2 * pre_bytes
    vmem_limit = int(min(max(2 * need, 32 << 20), 112 << 20))

    out = pl.pallas_call(
        functools.partial(fused_lstm_kernel, T=T),
        out_shape=jax.ShapeDtypeStruct((Bp, O), jnp.float32),
        in_specs=[pl.BlockSpec(memory_space=pltpu.MemorySpace.VMEM)
                  for _ in range(len(args))],
        out_specs=pl.BlockSpec(memory_space=pltpu.MemorySpace.VMEM),
        scratch_shapes=[pltpu.VMEM((T * Bp, 2 * H), jnp.float32)],
        compiler_params=pltpu.CompilerParams(vmem_limit_bytes=vmem_limit),
    )(*args)
    return out[:B]


@jax.jit
def lstm_model_forward(params, input_ids, attention_mask):
    del attention_mask  # unused in the reference forward (no pack_padded_sequence)
    B, T = input_ids.shape
    Bp = max(8, ((B + 7) // 8) * 8)   # sublane-aligned batch (f32 sublane count = 8)

    # Pad batch rows (padding rows are independent in the recurrence, sliced off
    # at the end), then emit the embedding gather directly in time-major
    # flattened order: row t*Bp + b <-> (time t, batch b).
    ids_p = jnp.pad(input_ids, ((0, Bp - B), (0, 0)))          # (Bp, T)
    ids_tb = jnp.transpose(ids_p).reshape(-1)                  # (T*Bp,)
    x2d = jnp.take(params["embedding"], ids_tb, axis=0)        # (T*Bp, E) f32
    return _fused_forward(x2d, params, T=T, B=B, Bp=Bp)        # (B, O)


# ----------------------------------------------------------------------------
# Deterministic parameter init (PyTorch-equivalent distributions, fused layout)
# ----------------------------------------------------------------------------
def init_params(key, vocab_size, embedding_dim, hidden_dim, output_dim, pad_idx):
    H, E = hidden_dim, embedding_dim
    G = 4 * H
    keys = iter(jax.random.split(key, 32))

    def uni(shape, scale):
        return jax.random.uniform(next(keys), shape, jnp.float32, -scale, scale)

    def pack_cols(w_f, w_b):
        # per-direction gate blocks [i,f,o,g] -> fused gate-major columns
        # [i_f,i_b,f_f,f_b,o_f,o_b,g_f,g_b]
        cols = []
        for k in range(4):
            cols += [w_f[..., k * H:(k + 1) * H], w_b[..., k * H:(k + 1) * H]]
        return jnp.concatenate(cols, axis=-1)

    def pack_hh(w_f, w_b):
        # (H,4H) fwd / (H,4H) bwd -> (2H,8H) block-structured: rows[:H] feed the
        # fwd gate columns, rows[H:] feed the bwd gate columns, zeros elsewhere.
        blk = jnp.zeros((2 * H, 2 * G), jnp.float32)
        for k in range(4):
            blk = blk.at[:H, (2 * k) * H:(2 * k + 1) * H].set(w_f[:, k * H:(k + 1) * H])
            blk = blk.at[H:, (2 * k + 1) * H:(2 * k + 2) * H].set(w_b[:, k * H:(k + 1) * H])
        return blk

    params = {}
    emb = jax.random.normal(next(keys), (vocab_size, E), jnp.float32)
    params["embedding"] = emb.at[pad_idx].set(0.0)   # padding_idx row is zero

    # LSTM weights: U(-1/sqrt(H), 1/sqrt(H)). NOTE: gate order here is [i,f,o,g]
    # per direction (PyTorch stores [i,f,g,o]) -- permute when importing weights.
    s = 1.0 / float(H) ** 0.5
    for layer, d_in in ((0, E), (1, 2 * H)):
        w_ih_f = uni((d_in, G), s)
        w_ih_b = uni((d_in, G), s)
        w_hh_f = uni((H, G), s)
        w_hh_b = uni((H, G), s)
        b_f = uni((G,), s) + uni((G,), s)            # b_ih + b_hh (fwd)
        b_b = uni((G,), s) + uni((G,), s)            # b_ih + b_hh (bwd)
        params[f"w_ih{layer}"] = pack_cols(w_ih_f, w_ih_b)
        params[f"whh{layer}_blk"] = pack_hh(w_hh_f, w_hh_b)
        params[f"b{layer}"] = pack_cols(b_f[None, :], b_b[None, :])   # (1, 8H)

    sf = 1.0 / float(2 * H) ** 0.5
    params["fc_w"] = uni((2 * H, output_dim), sf)
    params["fc_b"] = uni((output_dim,), sf).reshape(1, output_dim)
    return params


if __name__ == "__main__":
    vocab_size, embedding_dim, hidden_dim, output_dim, pad_idx = 50, 16, 32, 4, 0
    B, T = 2, 8

    key = jax.random.PRNGKey(0)
    k_param, k_ids = jax.random.split(key)
    params = init_params(k_param, vocab_size, embedding_dim, hidden_dim,
                         output_dim, pad_idx)

    input_ids = jax.random.randint(k_ids, (B, T), 0, vocab_size, dtype=jnp.int32)
    attention_mask = jnp.ones((B, T), dtype=jnp.int32)

    out = lstm_model_forward(params, input_ids, attention_mask)
    jax.block_until_ready(out)
    assert out.shape == (B, output_dim)
    assert bool(jnp.all(jnp.isfinite(out)))
    print("KERNEL_OK")
</pallas_src>

<mosaic_0001>
module attributes {stable_mosaic.version = 11 : i64} {
  func.func @fused_lstm_kernel(%arg0: memref<64x16xbf16, #tpu.memory_space<vmem>>, %arg1: memref<16x256xbf16, #tpu.memory_space<vmem>>, %arg2: memref<1x256xf32, #tpu.memory_space<vmem>>, %arg3: memref<64x256xbf16, #tpu.memory_space<vmem>>, %arg4: memref<64x256xbf16, #tpu.memory_space<vmem>>, %arg5: memref<1x256xf32, #tpu.memory_space<vmem>>, %arg6: memref<64x256xbf16, #tpu.memory_space<vmem>>, %arg7: memref<64x4xf32, #tpu.memory_space<vmem>>, %arg8: memref<1x4xf32, #tpu.memory_space<vmem>>, %arg9: memref<8x4xf32, #tpu.memory_space<vmem>>, %arg10: memref<64x64xf32, #tpu.memory_space<vmem>>) attributes {dimension_semantics = [], scalar_prefetch = 0 : i64, scratch_operands = 1 : i64, tpu.core_type = #tpu.core_type<tc>} {
    %0 = tpu.iota {dimensions = array<i32: 1>} : vector<8x256xi32>
    %c192_i32 = arith.constant 192 : i32
    %1 = vector.broadcast %c192_i32 : i32 to vector<8x256xi32>
    %2 = arith.cmpi slt, %0, %1 : vector<8x256xi32>
    %c64_i32 = arith.constant 64 : i32
    %c0_i32 = arith.constant 0 : i32
    %3 = arith.cmpi eq, %c64_i32, %c0_i32 : i32
    %c1_i32 = arith.constant 1 : i32
    %4 = arith.select %3, %c1_i32, %c64_i32 : i32
    %5 = vector.broadcast %4 : i32 to vector<8x256xi32>
    %6 = arith.remsi %0, %5 : vector<8x256xi32>
    %c0_i32_0 = arith.constant 0 : i32
    %7 = vector.broadcast %c0_i32_0 : i32 to vector<8x256xi32>
    %8 = arith.cmpi ne, %6, %7 : vector<8x256xi32>
    %c0_i32_1 = arith.constant 0 : i32
    %9 = vector.broadcast %c0_i32_1 : i32 to vector<8x256xi32>
    %10 = arith.cmpi slt, %6, %9 : vector<8x256xi32>
    %c0_i32_2 = arith.constant 0 : i32
    %11 = arith.cmpi slt, %4, %c0_i32_2 : i32
    %12 = vector.broadcast %11 : i1 to vector<8x256xi1>
    %13 = vector.broadcast %12 : vector<8x256xi1> to vector<8x256xi1>
    %14 = arith.xori %10, %13 : vector<8x256xi1>
    %15 = arith.andi %14, %8 : vector<8x256xi1>
    %16 = vector.broadcast %4 : i32 to vector<8x256xi32>
    %17 = arith.addi %6, %16 : vector<8x256xi32>
    %18 = arith.select %15, %17, %6 : vector<8x256xi1>, vector<8x256xi32>
    %c32_i32 = arith.constant 32 : i32
    %19 = vector.broadcast %c32_i32 : i32 to vector<8x256xi32>
    %20 = arith.cmpi slt, %18, %19 : vector<8x256xi32>
    %c0 = arith.constant 0 : index
    %c0_3 = arith.constant 0 : index
    %21 = vector.load %arg0[%c0, %c0_3] : memref<64x16xbf16, #tpu.memory_space<vmem>>, vector<64x16xbf16>
    %c0_4 = arith.constant 0 : index
    %c0_5 = arith.constant 0 : index
    %22 = vector.load %arg1[%c0_4, %c0_5] : memref<16x256xbf16, #tpu.memory_space<vmem>>, vector<16x256xbf16>
    %cst = arith.constant dense<0.000000e+00> : vector<64x256xf32>
    %23 = tpu.matmul %21, %22, %cst {dimension_numbers = #tpu.dot_dimension_numbers<[1], [0], [0], [1], [0, 0, 1, 1], [], []>} : vector<64x16xbf16>, vector<16x256xbf16>, vector<64x256xf32> -> vector<64x256xf32>
    %c0_6 = arith.constant 0 : index
    %c0_7 = arith.constant 0 : index
    %24 = vector.load %arg2[%c0_6, %c0_7] : memref<1x256xf32, #tpu.memory_space<vmem>>, vector<1x256xf32>
    %25 = vector.broadcast %24 : vector<1x256xf32> to vector<64x256xf32>
    %26 = arith.addf %23, %25 : vector<64x256xf32>
    %cst_8 = arith.constant 0.000000e+00 : f32
    %27 = vector.broadcast %cst_8 : f32 to vector<8x64xf32>
    %28 = vector.extract_strided_slice %26 {offsets = [0, 0], sizes = [8, 256], strides = [1, 1]} : vector<64x256xf32> to vector<8x256xf32>
    %29 = vector.extract_strided_slice %26 {offsets = [56, 0], sizes = [8, 256], strides = [1, 1]} : vector<64x256xf32> to vector<8x256xf32>
    %30 = arith.select %20, %28, %29 : vector<8x256xi1>, vector<8x256xf32>
    %31 = arith.truncf %27 : vector<8x64xf32> to vector<8x64xbf16>
    %c0_9 = arith.constant 0 : index
    %c0_10 = arith.constant 0 : index
    %32 = vector.load %arg3[%c0_9, %c0_10] : memref<64x256xbf16, #tpu.memory_space<vmem>>, vector<64x256xbf16>
    %cst_11 = arith.constant dense<0.000000e+00> : vector<8x256xf32>
    %33 = tpu.matmul %31, %32, %cst_11 {dimension_numbers = #tpu.dot_dimension_numbers<[1], [0], [0], [1], [0, 0, 1, 1], [], []>} : vector<8x64xbf16>, vector<64x256xbf16>, vector<8x256xf32> -> vector<8x256xf32>
    %34 = arith.addf %30, %33 : vector<8x256xf32>
    %cst_12 = arith.constant 2.000000e+00 : f32
    %35 = vector.broadcast %cst_12 : f32 to vector<8x256xf32>
    %36 = arith.mulf %35, %34 : vector<8x256xf32>
    %37 = arith.select %2, %34, %36 : vector<8x256xi1>, vector<8x256xf32>
    %38 = arith.negf %37 : vector<8x256xf32>
    %39 = math.exp %38 : vector<8x256xf32>
    %cst_13 = arith.constant 1.000000e+00 : f32
    %40 = vector.broadcast %cst_13 : f32 to vector<8x256xf32>
    %41 = arith.addf %40, %39 : vector<8x256xf32>
    %42 = arith.divf %40, %41 : vector<8x256xf32>
    %cst_14 = arith.constant 2.000000e+00 : f32
    %43 = vector.broadcast %cst_14 : f32 to vector<8x256xf32>
    %44 = arith.mulf %43, %42 : vector<8x256xf32>
    %cst_15 = arith.constant 1.000000e+00 : f32
    %45 = vector.broadcast %cst_15 : f32 to vector<8x256xf32>
    %46 = arith.subf %44, %45 : vector<8x256xf32>
    %47 = arith.select %2, %42, %46 : vector<8x256xi1>, vector<8x256xf32>
    %48 = vector.extract_strided_slice %47 {offsets = [0, 0], sizes = [8, 64], strides = [1, 1]} : vector<8x256xf32> to vector<8x64xf32>
    %49 = vector.extract_strided_slice %47 {offsets = [0, 64], sizes = [8, 64], strides = [1, 1]} : vector<8x256xf32> to vector<8x64xf32>
    %50 = vector.extract_strided_slice %47 {offsets = [0, 128], sizes = [8, 64], strides = [1, 1]} : vector<8x256xf32> to vector<8x64xf32>
    %51 = vector.extract_strided_slice %47 {offsets = [0, 192], sizes = [8, 64], strides = [1, 1]} : vector<8x256xf32> to vector<8x64xf32>
    %52 = arith.mulf %49, %27 : vector<8x64xf32>
    %53 = arith.mulf %48, %51 : vector<8x64xf32>
    %54 = arith.addf %52, %53 : vector<8x64xf32>
    %55 = math.tanh %54 : vector<8x64xf32>
    %56 = arith.mulf %50, %55 : vector<8x64xf32>
    %57 = vector.extract_strided_slice %56 {offsets = [0, 0], sizes = [8, 32], strides = [1, 1]} : vector<8x64xf32> to vector<8x32xf32>
    %c0_16 = arith.constant 0 : index
    %c0_17 = arith.constant 0 : index
    %58 = vector.load %arg10[%c0_16, %c0_17] : memref<64x64xf32, #tpu.memory_space<vmem>>, vector<8x32xf32>
    tpu.vector_store %arg10[%c0_16, %c0_17], %57 {strides = array<i32>} : memref<64x64xf32, #tpu.memory_space<vmem>>, vector<8x32xf32>,
    %59 = vector.extract_strided_slice %56 {offsets = [0, 32], sizes = [8, 32], strides = [1, 1]} : vector<8x64xf32> to vector<8x32xf32>
    %c56 = arith.constant 56 : index
    %c32 = arith.constant 32 : index
    %60 = vector.load %arg10[%c56, %c32] : memref<64x64xf32, #tpu.memory_space<vmem>>, vector<8x32xf32>
    tpu.vector_store %arg10[%c56, %c32], %59 {strides = array<i32>} : memref<64x64xf32, #tpu.memory_space<vmem>>, vector<8x32xf32>,
    %61 = vector.extract_strided_slice %26 {offsets = [8, 0], sizes = [8, 256], strides = [1, 1]} : vector<64x256xf32> to vector<8x256xf32>
    %62 = vector.extract_strided_slice %26 {offsets = [48, 0], sizes = [8, 256], strides = [1, 1]} : vector<64x256xf32> to vector<8x256xf32>
    %63 = arith.select %20, %61, %62 : vector<8x256xi1>, vector<8x256xf32>
    %64 = arith.truncf %56 : vector<8x64xf32> to vector<8x64xbf16>
    %c0_18 = arith.constant 0 : index
    %c0_19 = arith.constant 0 : index
    %65 = vector.load %arg3[%c0_18, %c0_19] : memref<64x256xbf16, #tpu.memory_space<vmem>>, vector<64x256xbf16>
    %cst_20 = arith.constant dense<0.000000e+00> : vector<8x256xf32>
    %66 = tpu.matmul %64, %65, %cst_20 {dimension_numbers = #tpu.dot_dimension_numbers<[1], [0], [0], [1], [0, 0, 1, 1], [], []>} : vector<8x64xbf16>, vector<64x256xbf16>, vector<8x256xf32> -> vector<8x256xf32>
    %67 = arith.addf %63, %66 : vector<8x256xf32>
    %cst_21 = arith.constant 2.000000e+00 : f32
    %68 = vector.broadcast %cst_21 : f32 to vector<8x256xf32>
    %69 = arith.mulf %68, %67 : vector<8x256xf32>
    %70 = arith.select %2, %67, %69 : vector<8x256xi1>, vector<8x256xf32>
    %71 = arith.negf %70 : vector<8x256xf32>
    %72 = math.exp %71 : vector<8x256xf32>
    %cst_22 = arith.constant 1.000000e+00 : f32
    %73 = vector.broadcast %cst_22 : f32 to vector<8x256xf32>
    %74 = arith.addf %73, %72 : vector<8x256xf32>
    %75 = arith.divf %73, %74 : vector<8x256xf32>
    %cst_23 = arith.constant 2.000000e+00 : f32
    %76 = vector.broadcast %cst_23 : f32 to vector<8x256xf32>
    %77 = arith.mulf %76, %75 : vector<8x256xf32>
    %cst_24 = arith.constant 1.000000e+00 : f32
    %78 = vector.broadcast %cst_24 : f32 to vector<8x256xf32>
    %79 = arith.subf %77, %78 : vector<8x256xf32>
    %80 = arith.select %2, %75, %79 : vector<8x256xi1>, vector<8x256xf32>
    %81 = vector.extract_strided_slice %80 {offsets = [0, 0], sizes = [8, 64], strides = [1, 1]} : vector<8x256xf32> to vector<8x64xf32>
    %82 = vector.extract_strided_slice %80 {offsets = [0, 64], sizes = [8, 64], strides = [1, 1]} : vector<8x256xf32> to vector<8x64xf32>
    %83 = vector.extract_strided_slice %80 {offsets = [0, 128], sizes = [8, 64], strides = [1, 1]} : vector<8x256xf32> to vector<8x64xf32>
    %84 = vector.extract_strided_slice %80 {offsets = [0, 192], sizes = [8, 64], strides = [1, 1]} : vector<8x256xf32> to vector<8x64xf32>
    %85 = arith.mulf %82, %54 : vector<8x64xf32>
    %86 = arith.mulf %81, %84 : vector<8x64xf32>
    %87 = arith.addf %85, %86 : vector<8x64xf32>
    %88 = math.tanh %87 : vector<8x64xf32>
    %89 = arith.mulf %83, %88 : vector<8x64xf32>
    %90 = vector.extract_strided_slice %89 {offsets = [0, 0], sizes = [8, 32], strides = [1, 1]} : vector<8x64xf32> to vector<8x32xf32>
    %c8 = arith.constant 8 : index
    %c0_25 = arith.constant 0 : index
    %91 = vector.load %arg10[%c8, %c0_25] : memref<64x64xf32, #tpu.memory_space<vmem>>, vector<8x32xf32>
    tpu.vector_store %arg10[%c8, %c0_25], %90 {strides = array<i32>} : memref<64x64xf32, #tpu.memory_space<vmem>>, vector<8x32xf32>,
    %92 = vector.extract_strided_slice %89 {offsets = [0, 32], sizes = [8, 32], strides = [1, 1]} : vector<8x64xf32> to vector<8x32xf32>
    %c48 = arith.constant 48 : index
    %c32_26 = arith.constant 32 : index
    %93 = vector.load %arg10[%c48, %c32_26] : memref<64x64xf32, #tpu.memory_space<vmem>>, vector<8x32xf32>
    tpu.vector_store %arg10[%c48, %c32_26], %92 {strides = array<i32>} : memref<64x64xf32, #tpu.memory_space<vmem>>, vector<8x32xf32>,
    %94 = vector.extract_strided_slice %26 {offsets = [16, 0], sizes = [8, 256], strides = [1, 1]} : vector<64x256xf32> to vector<8x256xf32>
    %95 = vector.extract_strided_slice %26 {offsets = [40, 0], sizes = [8, 256], strides = [1, 1]} : vector<64x256xf32> to vector<8x256xf32>
    %96 = arith.select %20, %94, %95 : vector<8x256xi1>, vector<8x256xf32>
    %97 = arith.truncf %89 : vector<8x64xf32> to vector<8x64xbf16>
    %c0_27 = arith.constant 0 : index
    %c0_28 = arith.constant 0 : index
    %98 = vector.load %arg3[%c0_27, %c0_28] : memref<64x256xbf16, #tpu.memory_space<vmem>>, vector<64x256xbf16>
    %cst_29 = arith.constant dense<0.000000e+00> : vector<8x256xf32>
    %99 = tpu.matmul %97, %98, %cst_29 {dimension_numbers = #tpu.dot_dimension_numbers<[1], [0], [0], [1], [0, 0, 1, 1], [], []>} : vector<8x64xbf16>, vector<64x256xbf16>, vector<8x256xf32> -> vector<8x256xf32>
    %100 = arith.addf %96, %99 : vector<8x256xf32>
    %cst_30 = arith.constant 2.000000e+00 : f32
    %101 = vector.broadcast %cst_30 : f32 to vector<8x256xf32>
    %102 = arith.mulf %101, %100 : vector<8x256xf32>
    %103 = arith.select %2, %100, %102 : vector<8x256xi1>, vector<8x256xf32>
    %104 = arith.negf %103 : vector<8x256xf32>
    %105 = math.exp %104 : vector<8x256xf32>
    %cst_31 = arith.constant 1.000000e+00 : f32
    %106 = vector.broadcast %cst_31 : f32 to vector<8x256xf32>
    %107 = arith.addf %106, %105 : vector<8x256xf32>
    %108 = arith.divf %106, %107 : vector<8x256xf32>
    %cst_32 = arith.constant 2.000000e+00 : f32
    %109 = vector.broadcast %cst_32 : f32 to vector<8x256xf32>
    %110 = arith.mulf %109, %108 : vector<8x256xf32>
    %cst_33 = arith.constant 1.000000e+00 : f32
    %111 = vector.broadcast %cst_33 : f32 to vector<8x256xf32>
    %112 = arith.subf %110, %111 : vector<8x256xf32>
    %113 = arith.select %2, %108, %112 : vector<8x256xi1>, vector<8x256xf32>
    %114 = vector.extract_strided_slice %113 {offsets = [0, 0], sizes = [8, 64], strides = [1, 1]} : vector<8x256xf32> to vector<8x64xf32>
    %115 = vector.extract_strided_slice %113 {offsets = [0, 64], sizes = [8, 64], strides = [1, 1]} : vector<8x256xf32> to vector<8x64xf32>
    %116 = vector.extract_strided_slice %113 {offsets = [0, 128], sizes = [8, 64], strides = [1, 1]} : vector<8x256xf32> to vector<8x64xf32>
    %117 = vector.extract_strided_slice %113 {offsets = [0, 192], sizes = [8, 64], strides = [1, 1]} : vector<8x256xf32> to vector<8x64xf32>
    %118 = arith.mulf %115, %87 : vector<8x64xf32>
    %119 = arith.mulf %114, %117 : vector<8x64xf32>
    %120 = arith.addf %118, %119 : vector<8x64xf32>
    %121 = math.tanh %120 : vector<8x64xf32>
    %122 = arith.mulf %116, %121 : vector<8x64xf32>
    %123 = vector.extract_strided_slice %122 {offsets = [0, 0], sizes = [8, 32], strides = [1, 1]} : vector<8x64xf32> to vector<8x32xf32>
    %c16 = arith.constant 16 : index
    %c0_34 = arith.constant 0 : index
    %124 = vector.load %arg10[%c16, %c0_34] : memref<64x64xf32, #tpu.memory_space<vmem>>, vector<8x32xf32>
    tpu.vector_store %arg10[%c16, %c0_34], %123 {strides = array<i32>} : memref<64x64xf32, #tpu.memory_space<vmem>>, vector<8x32xf32>,
    %125 = vector.extract_strided_slice %122 {offsets = [0, 32], sizes = [8, 32], strides = [1, 1]} : vector<8x64xf32> to vector<8x32xf32>
    %c40 = arith.constant 40 : index
    %c32_35 = arith.constant 32 : index
    %126 = vector.load %arg10[%c40, %c32_35] : memref<64x64xf32, #tpu.memory_space<vmem>>, vector<8x32xf32>
    tpu.vector_store %arg10[%c40, %c32_35], %125 {strides = array<i32>} : memref<64x64xf32, #tpu.memory_space<vmem>>, vector<8x32xf32>,
    %127 = vector.extract_strided_slice %26 {offsets = [24, 0], sizes = [8, 256], strides = [1, 1]} : vector<64x256xf32> to vector<8x256xf32>
    %128 = vector.extract_strided_slice %26 {offsets = [32, 0], sizes = [8, 256], strides = [1, 1]} : vector<64x256xf32> to vector<8x256xf32>
    %129 = arith.select %20, %127, %128 : vector<8x256xi1>, vector<8x256xf32>
    %130 = arith.truncf %122 : vector<8x64xf32> to vector<8x64xbf16>
    %c0_36 = arith.constant 0 : index
    %c0_37 = arith.constant 0 : index
    %131 = vector.load %arg3[%c0_36, %c0_37] : memref<64x256xbf16, #tpu.memory_space<vmem>>, vector<64x256xbf16>
    %cst_38 = arith.constant dense<0.000000e+00> : vector<8x256xf32>
    %132 = tpu.matmul %130, %131, %cst_38 {dimension_numbers = #tpu.dot_dimension_numbers<[1], [0], [0], [1], [0, 0, 1, 1], [], []>} : vector<8x64xbf16>, vector<64x256xbf16>, vector<8x256xf32> -> vector<8x256xf32>
    %133 = arith.addf %129, %132 : vector<8x256xf32>
    %cst_39 = arith.constant 2.000000e+00 : f32
    %134 = vector.broadcast %cst_39 : f32 to vector<8x256xf32>
    %135 = arith.mulf %134, %133 : vector<8x256xf32>
    %136 = arith.select %2, %133, %135 : vector<8x256xi1>, vector<8x256xf32>
    %137 = arith.negf %136 : vector<8x256xf32>
    %138 = math.exp %137 : vector<8x256xf32>
    %cst_40 = arith.constant 1.000000e+00 : f32
    %139 = vector.broadcast %cst_40 : f32 to vector<8x256xf32>
    %140 = arith.addf %139, %138 : vector<8x256xf32>
    %141 = arith.divf %139, %140 : vector<8x256xf32>
    %cst_41 = arith.constant 2.000000e+00 : f32
    %142 = vector.broadcast %cst_41 : f32 to vector<8x256xf32>
    %143 = arith.mulf %142, %141 : vector<8x256xf32>
    %cst_42 = arith.constant 1.000000e+00 : f32
    %144 = vector.broadcast %cst_42 : f32 to vector<8x256xf32>
    %145 = arith.subf %143, %144 : vector<8x256xf32>
    %146 = arith.select %2, %141, %145 : vector<8x256xi1>, vector<8x256xf32>
    %147 = vector.extract_strided_slice %146 {offsets = [0, 0], sizes = [8, 64], strides = [1, 1]} : vector<8x256xf32> to vector<8x64xf32>
    %148 = vector.extract_strided_slice %146 {offsets = [0, 64], sizes = [8, 64], strides = [1, 1]} : vector<8x256xf32> to vector<8x64xf32>
    %149 = vector.extract_strided_slice %146 {offsets = [0, 128], sizes = [8, 64], strides = [1, 1]} : vector<8x256xf32> to vector<8x64xf32>
    %150 = vector.extract_strided_slice %146 {offsets = [0, 192], sizes = [8, 64], strides = [1, 1]} : vector<8x256xf32> to vector<8x64xf32>
    %151 = arith.mulf %148, %120 : vector<8x64xf32>
    %152 = arith.mulf %147, %150 : vector<8x64xf32>
    %153 = arith.addf %151, %152 : vector<8x64xf32>
    %154 = math.tanh %153 : vector<8x64xf32>
    %155 = arith.mulf %149, %154 : vector<8x64xf32>
    %156 = vector.extract_strided_slice %155 {offsets = [0, 0], sizes = [8, 32], strides = [1, 1]} : vector<8x64xf32> to vector<8x32xf32>
    %c24 = arith.constant 24 : index
    %c0_43 = arith.constant 0 : index
    %157 = vector.load %arg10[%c24, %c0_43] : memref<64x64xf32, #tpu.memory_space<vmem>>, vector<8x32xf32>
    tpu.vector_store %arg10[%c24, %c0_43], %156 {strides = array<i32>} : memref<64x64xf32, #tpu.memory_space<vmem>>, vector<8x32xf32>,
    %158 = vector.extract_strided_slice %155 {offsets = [0, 32], sizes = [8, 32], strides = [1, 1]} : vector<8x64xf32> to vector<8x32xf32>
    %c32_44 = arith.constant 32 : index
    %c32_45 = arith.constant 32 : index
    %159 = vector.load %arg10[%c32_44, %c32_45] : memref<64x64xf32, #tpu.memory_space<vmem>>, vector<8x32xf32>
    tpu.vector_store %arg10[%c32_44, %c32_45], %158 {strides = array<i32>} : memref<64x64xf32, #tpu.memory_space<vmem>>, vector<8x32xf32>,
    %160 = vector.extract_strided_slice %26 {offsets = [32, 0], sizes = [8, 256], strides = [1, 1]} : vector<64x256xf32> to vector<8x256xf32>
    %161 = vector.extract_strided_slice %26 {offsets = [24, 0], sizes = [8, 256], strides = [1, 1]} : vector<64x256xf32> to vector<8x256xf32>
    %162 = arith.select %20, %160, %161 : vector<8x256xi1>, vector<8x256xf32>
    %163 = arith.truncf %155 : vector<8x64xf32> to vector<8x64xbf16>
    %c0_46 = arith.constant 0 : index
    %c0_47 = arith.constant 0 : index
    %164 = vector.load %arg3[%c0_46, %c0_47] : memref<64x256xbf16, #tpu.memory_space<vmem>>, vector<64x256xbf16>
    %cst_48 = arith.constant dense<0.000000e+00> : vector<8x256xf32>
    %165 = tpu.matmul %163, %164, %cst_48 {dimension_numbers = #tpu.dot_dimension_numbers<[1], [0], [0], [1], [0, 0, 1, 1], [], []>} : vector<8x64xbf16>, vector<64x256xbf16>, vector<8x256xf32> -> vector<8x256xf32>
    %166 = arith.addf %162, %165 : vector<8x256xf32>
    %cst_49 = arith.constant 2.000000e+00 : f32
    %167 = vector.broadcast %cst_49 : f32 to vector<8x256xf32>
    %168 = arith.mulf %167, %166 : vector<8x256xf32>
    %169 = arith.select %2, %166, %168 : vector<8x256xi1>, vector<8x256xf32>
    %170 = arith.negf %169 : vector<8x256xf32>
    %171 = math.exp %170 : vector<8x256xf32>
    %cst_50 = arith.constant 1.000000e+00 : f32
    %172 = vector.broadcast %cst_50 : f32 to vector<8x256xf32>
    %173 = arith.addf %172, %171 : vector<8x256xf32>
    %174 = arith.divf %172, %173 : vector<8x256xf32>
    %cst_51 = arith.constant 2.000000e+00 : f32
    %175 = vector.broadcast %cst_51 : f32 to vector<8x256xf32>
    %176 = arith.mulf %175, %174 : vector<8x256xf32>
    %cst_52 = arith.constant 1.000000e+00 : f32
    %177 = vector.broadcast %cst_52 : f32 to vector<8x256xf32>
    %178 = arith.subf %176, %177 : vector<8x256xf32>
    %179 = arith.select %2, %174, %178 : vector<8x256xi1>, vector<8x256xf32>
    %180 = vector.extract_strided_slice %179 {offsets = [0, 0], sizes = [8, 64], strides = [1, 1]} : vector<8x256xf32> to vector<8x64xf32>
    %181 = vector.extract_strided_slice %179 {offsets = [0, 64], sizes = [8, 64], strides = [1, 1]} : vector<8x256xf32> to vector<8x64xf32>
    %182 = vector.extract_strided_slice %179 {offsets = [0, 128], sizes = [8, 64], strides = [1, 1]} : vector<8x256xf32> to vector<8x64xf32>
    %183 = vector.extract_strided_slice %179 {offsets = [0, 192], sizes = [8, 64], strides = [1, 1]} : vector<8x256xf32> to vector<8x64xf32>
    %184 = arith.mulf %181, %153 : vector<8x64xf32>
    %185 = arith.mulf %180, %183 : vector<8x64xf32>
    %186 = arith.addf %184, %185 : vector<8x64xf32>
    %187 = math.tanh %186 : vector<8x64xf32>
    %188 = arith.mulf %182, %187 : vector<8x64xf32>
    %189 = vector.extract_strided_slice %188 {offsets = [0, 0], sizes = [8, 32], strides = [1, 1]} : vector<8x64xf32> to vector<8x32xf32>
    %c32_53 = arith.constant 32 : index
    %c0_54 = arith.constant 0 : index
    %190 = vector.load %arg10[%c32_53, %c0_54] : memref<64x64xf32, #tpu.memory_space<vmem>>, vector<8x32xf32>
    tpu.vector_store %arg10[%c32_53, %c0_54], %189 {strides = array<i32>} : memref<64x64xf32, #tpu.memory_space<vmem>>, vector<8x32xf32>,
    %191 = vector.extract_strided_slice %188 {offsets = [0, 32], sizes = [8, 32], strides = [1, 1]} : vector<8x64xf32> to vector<8x32xf32>
    %c24_55 = arith.constant 24 : index
    %c32_56 = arith.constant 32 : index
    %192 = vector.load %arg10[%c24_55, %c32_56] : memref<64x64xf32, #tpu.memory_space<vmem>>, vector<8x32xf32>
    tpu.vector_store %arg10[%c24_55, %c32_56], %191 {strides = array<i32>} : memref<64x64xf32, #tpu.memory_space<vmem>>, vector<8x32xf32>,
    %193 = vector.extract_strided_slice %26 {offsets = [40, 0], sizes = [8, 256], strides = [1, 1]} : vector<64x256xf32> to vector<8x256xf32>
    %194 = vector.extract_strided_slice %26 {offsets = [16, 0], sizes = [8, 256], strides = [1, 1]} : vector<64x256xf32> to vector<8x256xf32>
    %195 = arith.select %20, %193, %194 : vector<8x256xi1>, vector<8x256xf32>
    %196 = arith.truncf %188 : vector<8x64xf32> to vector<8x64xbf16>
    %c0_57 = arith.constant 0 : index
    %c0_58 = arith.constant 0 : index
    %197 = vector.load %arg3[%c0_57, %c0_58] : memref<64x256xbf16, #tpu.memory_space<vmem>>, vector<64x256xbf16>
    %cst_59 = arith.constant dense<0.000000e+00> : vector<8x256xf32>
    %198 = tpu.matmul %196, %197, %cst_59 {dimension_numbers = #tpu.dot_dimension_numbers<[1], [0], [0], [1], [0, 0, 1, 1], [], []>} : vector<8x64xbf16>, vector<64x256xbf16>, vector<8x256xf32> -> vector<8x256xf32>
    %199 = arith.addf %195, %198 : vector<8x256xf32>
    %cst_60 = arith.constant 2.000000e+00 : f32
    %200 = vector.broadcast %cst_60 : f32 to vector<8x256xf32>
    %201 = arith.mulf %200, %199 : vector<8x256xf32>
    %202 = arith.select %2, %199, %201 : vector<8x256xi1>, vector<8x256xf32>
    %203 = arith.negf %202 : vector<8x256xf32>
    %204 = math.exp %203 : vector<8x256xf32>
    %cst_61 = arith.constant 1.000000e+00 : f32
    %205 = vector.broadcast %cst_61 : f32 to vector<8x256xf32>
    %206 = arith.addf %205, %204 : vector<8x256xf32>
    %207 = arith.divf %205, %206 : vector<8x256xf32>
    %cst_62 = arith.constant 2.000000e+00 : f32
    %208 = vector.broadcast %cst_62 : f32 to vector<8x256xf32>
    %209 = arith.mulf %208, %207 : vector<8x256xf32>
    %cst_63 = arith.constant 1.000000e+00 : f32
    %210 = vector.broadcast %cst_63 : f32 to vector<8x256xf32>
    %211 = arith.subf %209, %210 : vector<8x256xf32>
    %212 = arith.select %2, %207, %211 : vector<8x256xi1>, vector<8x256xf32>
    %213 = vector.extract_strided_slice %212 {offsets = [0, 0], sizes = [8, 64], strides = [1, 1]} : vector<8x256xf32> to vector<8x64xf32>
    %214 = vector.extract_strided_slice %212 {offsets = [0, 64], sizes = [8, 64], strides = [1, 1]} : vector<8x256xf32> to vector<8x64xf32>
    %215 = vector.extract_strided_slice %212 {offsets = [0, 128], sizes = [8, 64], strides = [1, 1]} : vector<8x256xf32> to vector<8x64xf32>
    %216 = vector.extract_strided_slice %212 {offsets = [0, 192], sizes = [8, 64], strides = [1, 1]} : vector<8x256xf32> to vector<8x64xf32>
    %217 = arith.mulf %214, %186 : vector<8x64xf32>
    %218 = arith.mulf %213, %216 : vector<8x64xf32>
    %219 = arith.addf %217, %218 : vector<8x64xf32>
    %220 = math.tanh %219 : vector<8x64xf32>
    %221 = arith.mulf %215, %220 : vector<8x64xf32>
    %222 = vector.extract_strided_slice %221 {offsets = [0, 0], sizes = [8, 32], strides = [1, 1]} : vector<8x64xf32> to vector<8x32xf32>
    %c40_64 = arith.constant 40 : index
    %c0_65 = arith.constant 0 : index
    %223 = vector.load %arg10[%c40_64, %c0_65] : memref<64x64xf32, #tpu.memory_space<vmem>>, vector<8x32xf32>
    tpu.vector_store %arg10[%c40_64, %c0_65], %222 {strides = array<i32>} : memref<64x64xf32, #tpu.memory_space<vmem>>, vector<8x32xf32>,
    %224 = vector.extract_strided_slice %221 {offsets = [0, 32], sizes = [8, 32], strides = [1, 1]} : vector<8x64xf32> to vector<8x32xf32>
    %c16_66 = arith.constant 16 : index
    %c32_67 = arith.constant 32 : index
    %225 = vector.load %arg10[%c16_66, %c32_67] : memref<64x64xf32, #tpu.memory_space<vmem>>, vector<8x32xf32>
    tpu.vector_store %arg10[%c16_66, %c32_67], %224 {strides = array<i32>} : memref<64x64xf32, #tpu.memory_space<vmem>>, vector<8x32xf32>,
    %226 = vector.extract_strided_slice %26 {offsets = [48, 0], sizes = [8, 256], strides = [1, 1]} : vector<64x256xf32> to vector<8x256xf32>
    %227 = vector.extract_strided_slice %26 {offsets = [8, 0], sizes = [8, 256], strides = [1, 1]} : vector<64x256xf32> to vector<8x256xf32>
    %228 = arith.select %20, %226, %227 : vector<8x256xi1>, vector<8x256xf32>
    %229 = arith.truncf %221 : vector<8x64xf32> to vector<8x64xbf16>
    %c0_68 = arith.constant 0 : index
    %c0_69 = arith.constant 0 : index
    %230 = vector.load %arg3[%c0_68, %c0_69] : memref<64x256xbf16, #tpu.memory_space<vmem>>, vector<64x256xbf16>
    %cst_70 = arith.constant dense<0.000000e+00> : vector<8x256xf32>
    %231 = tpu.matmul %229, %230, %cst_70 {dimension_numbers = #tpu.dot_dimension_numbers<[1], [0], [0], [1], [0, 0, 1, 1], [], []>} : vector<8x64xbf16>, vector<64x256xbf16>, vector<8x256xf32> -> vector<8x256xf32>
    %232 = arith.addf %228, %231 : vector<8x256xf32>
    %cst_71 = arith.constant 2.000000e+00 : f32
    %233 = vector.broadcast %cst_71 : f32 to vector<8x256xf32>
    %234 = arith.mulf %233, %232 : vector<8x256xf32>
    %235 = arith.select %2, %232, %234 : vector<8x256xi1>, vector<8x256xf32>
    %236 = arith.negf %235 : vector<8x256xf32>
    %237 = math.exp %236 : vector<8x256xf32>
    %cst_72 = arith.constant 1.000000e+00 : f32
    %238 = vector.broadcast %cst_72 : f32 to vector<8x256xf32>
    %239 = arith.addf %238, %237 : vector<8x256xf32>
    %240 = arith.divf %238, %239 : vector<8x256xf32>
    %cst_73 = arith.constant 2.000000e+00 : f32
    %241 = vector.broadcast %cst_73 : f32 to vector<8x256xf32>
    %242 = arith.mulf %241, %240 : vector<8x256xf32>
    %cst_74 = arith.constant 1.000000e+00 : f32
    %243 = vector.broadcast %cst_74 : f32 to vector<8x256xf32>
    %244 = arith.subf %242, %243 : vector<8x256xf32>
    %245 = arith.select %2, %240, %244 : vector<8x256xi1>, vector<8x256xf32>
    %246 = vector.extract_strided_slice %245 {offsets = [0, 0], sizes = [8, 64], strides = [1, 1]} : vector<8x256xf32> to vector<8x64xf32>
    %247 = vector.extract_strided_slice %245 {offsets = [0, 64], sizes = [8, 64], strides = [1, 1]} : vector<8x256xf32> to vector<8x64xf32>
    %248 = vector.extract_strided_slice %245 {offsets = [0, 128], sizes = [8, 64], strides = [1, 1]} : vector<8x256xf32> to vector<8x64xf32>
    %249 = vector.extract_strided_slice %245 {offsets = [0, 192], sizes = [8, 64], strides = [1, 1]} : vector<8x256xf32> to vector<8x64xf32>
    %250 = arith.mulf %247, %219 : vector<8x64xf32>
    %251 = arith.mulf %246, %249 : vector<8x64xf32>
    %252 = arith.addf %250, %251 : vector<8x64xf32>
    %253 = math.tanh %252 : vector<8x64xf32>
    %254 = arith.mulf %248, %253 : vector<8x64xf32>
    %255 = vector.extract_strided_slice %254 {offsets = [0, 0], sizes = [8, 32], strides = [1, 1]} : vector<8x64xf32> to vector<8x32xf32>
    %c48_75 = arith.constant 48 : index
    %c0_76 = arith.constant 0 : index
    %256 = vector.load %arg10[%c48_75, %c0_76] : memref<64x64xf32, #tpu.memory_space<vmem>>, vector<8x32xf32>
    tpu.vector_store %arg10[%c48_75, %c0_76], %255 {strides = array<i32>} : memref<64x64xf32, #tpu.memory_space<vmem>>, vector<8x32xf32>,
    %257 = vector.extract_strided_slice %254 {offsets = [0, 32], sizes = [8, 32], strides = [1, 1]} : vector<8x64xf32> to vector<8x32xf32>
    %c8_77 = arith.constant 8 : index
    %c32_78 = arith.constant 32 : index
    %258 = vector.load %arg10[%c8_77, %c32_78] : memref<64x64xf32, #tpu.memory_space<vmem>>, vector<8x32xf32>
    tpu.vector_store %arg10[%c8_77, %c32_78], %257 {strides = array<i32>} : memref<64x64xf32, #tpu.memory_space<vmem>>, vector<8x32xf32>,
    %259 = vector.extract_strided_slice %26 {offsets = [56, 0], sizes = [8, 256], strides = [1, 1]} : vector<64x256xf32> to vector<8x256xf32>
    %260 = vector.extract_strided_slice %26 {offsets = [0, 0], sizes = [8, 256], strides = [1, 1]} : vector<64x256xf32> to vector<8x256xf32>
    %261 = arith.select %20, %259, %260 : vector<8x256xi1>, vector<8x256xf32>
    %262 = arith.truncf %254 : vector<8x64xf32> to vector<8x64xbf16>
    %c0_79 = arith.constant 0 : index
    %c0_80 = arith.constant 0 : index
    %263 = vector.load %arg3[%c0_79, %c0_80] : memref<64x256xbf16, #tpu.memory_space<vmem>>, vector<64x256xbf16>
    %cst_81 = arith.constant dense<0.000000e+00> : vector<8x256xf32>
    %264 = tpu.matmul %262, %263, %cst_81 {dimension_numbers = #tpu.dot_dimension_numbers<[1], [0], [0], [1], [0, 0, 1, 1], [], []>} : vector<8x64xbf16>, vector<64x256xbf16>, vector<8x256xf32> -> vector<8x256xf32>
    %265 = arith.addf %261, %264 : vector<8x256xf32>
    %cst_82 = arith.constant 2.000000e+00 : f32
    %266 = vector.broadcast %cst_82 : f32 to vector<8x256xf32>
    %267 = arith.mulf %266, %265 : vector<8x256xf32>
    %268 = arith.select %2, %265, %267 : vector<8x256xi1>, vector<8x256xf32>
    %269 = arith.negf %268 : vector<8x256xf32>
    %270 = math.exp %269 : vector<8x256xf32>
    %cst_83 = arith.constant 1.000000e+00 : f32
    %271 = vector.broadcast %cst_83 : f32 to vector<8x256xf32>
    %272 = arith.addf %271, %270 : vector<8x256xf32>
    %273 = arith.divf %271, %272 : vector<8x256xf32>
    %cst_84 = arith.constant 2.000000e+00 : f32
    %274 = vector.broadcast %cst_84 : f32 to vector<8x256xf32>
    %275 = arith.mulf %274, %273 : vector<8x256xf32>
    %cst_85 = arith.constant 1.000000e+00 : f32
    %276 = vector.broadcast %cst_85 : f32 to vector<8x256xf32>
    %277 = arith.subf %275, %276 : vector<8x256xf32>
    %278 = arith.select %2, %273, %277 : vector<8x256xi1>, vector<8x256xf32>
    %279 = vector.extract_strided_slice %278 {offsets = [0, 0], sizes = [8, 64], strides = [1, 1]} : vector<8x256xf32> to vector<8x64xf32>
    %280 = vector.extract_strided_slice %278 {offsets = [0, 64], sizes = [8, 64], strides = [1, 1]} : vector<8x256xf32> to vector<8x64xf32>
    %281 = vector.extract_strided_slice %278 {offsets = [0, 128], sizes = [8, 64], strides = [1, 1]} : vector<8x256xf32> to vector<8x64xf32>
    %282 = vector.extract_strided_slice %278 {offsets = [0, 192], sizes = [8, 64], strides = [1, 1]} : vector<8x256xf32> to vector<8x64xf32>
    %283 = arith.mulf %280, %252 : vector<8x64xf32>
    %284 = arith.mulf %279, %282 : vector<8x64xf32>
    %285 = arith.addf %283, %284 : vector<8x64xf32>
    %286 = math.tanh %285 : vector<8x64xf32>
    %287 = arith.mulf %281, %286 : vector<8x64xf32>
    %288 = vector.extract_strided_slice %287 {offsets = [0, 0], sizes = [8, 32], strides = [1, 1]} : vector<8x64xf32> to vector<8x32xf32>
    %c56_86 = arith.constant 56 : index
    %c0_87 = arith.constant 0 : index
    %289 = vector.load %arg10[%c56_86, %c0_87] : memref<64x64xf32, #tpu.memory_space<vmem>>, vector<8x32xf32>
    tpu.vector_store %arg10[%c56_86, %c0_87], %288 {strides = array<i32>} : memref<64x64xf32, #tpu.memory_space<vmem>>, vector<8x32xf32>,
    %290 = vector.extract_strided_slice %287 {offsets = [0, 32], sizes = [8, 32], strides = [1, 1]} : vector<8x64xf32> to vector<8x32xf32>
    %c0_88 = arith.constant 0 : index
    %c32_89 = arith.constant 32 : index
    %291 = vector.load %arg10[%c0_88, %c32_89] : memref<64x64xf32, #tpu.memory_space<vmem>>, vector<8x32xf32>
    tpu.vector_store %arg10[%c0_88, %c32_89], %290 {strides = array<i32>} : memref<64x64xf32, #tpu.memory_space<vmem>>, vector<8x32xf32>,
    %c0_90 = arith.constant 0 : index
    %c0_91 = arith.constant 0 : index
    %292 = vector.load %arg10[%c0_90, %c0_91] : memref<64x64xf32, #tpu.memory_space<vmem>>, vector<64x64xf32>
    %293 = arith.truncf %292 : vector<64x64xf32> to vector<64x64xbf16>
    %c0_92 = arith.constant 0 : index
    %c0_93 = arith.constant 0 : index
    %294 = vector.load %arg4[%c0_92, %c0_93] : memref<64x256xbf16, #tpu.memory_space<vmem>>, vector<64x256xbf16>
    %cst_94 = arith.constant dense<0.000000e+00> : vector<64x256xf32>
    %295 = tpu.matmul %293, %294, %cst_94 {dimension_numbers = #tpu.dot_dimension_numbers<[1], [0], [0], [1], [0, 0, 1, 1], [], []>} : vector<64x64xbf16>, vector<64x256xbf16>, vector<64x256xf32> -> vector<64x256xf32>
    %c0_95 = arith.constant 0 : index
    %c0_96 = arith.constant 0 : index
    %296 = vector.load %arg5[%c0_95, %c0_96] : memref<1x256xf32, #tpu.memory_space<vmem>>, vector<1x256xf32>
    %297 = vector.broadcast %296 : vector<1x256xf32> to vector<64x256xf32>
    %298 = arith.addf %295, %297 : vector<64x256xf32>
    %299 = vector.extract_strided_slice %298 {offsets = [0, 0], sizes = [8, 256], strides = [1, 1]} : vector<64x256xf32> to vector<8x256xf32>
    %300 = vector.extract_strided_slice %298 {offsets = [56, 0], sizes = [8, 256], strides = [1, 1]} : vector<64x256xf32> to vector<8x256xf32>
    %301 = arith.select %20, %299, %300 : vector<8x256xi1>, vector<8x256xf32>
    %302 = arith.truncf %27 : vector<8x64xf32> to vector<8x64xbf16>
    %c0_97 = arith.constant 0 : index
    %c0_98 = arith.constant 0 : index
    %303 = vector.load %arg6[%c0_97, %c0_98] : memref<64x256xbf16, #tpu.memory_space<vmem>>, vector<64x256xbf16>
    %cst_99 = arith.constant dense<0.000000e+00> : vector<8x256xf32>
    %304 = tpu.matmul %302, %303, %cst_99 {dimension_numbers = #tpu.dot_dimension_numbers<[1], [0], [0], [1], [0, 0, 1, 1], [], []>} : vector<8x64xbf16>, vector<64x256xbf16>, vector<8x256xf32> -> vector<8x256xf32>
    %305 = arith.addf %301, %304 : vector<8x256xf32>
    %cst_100 = arith.constant 2.000000e+00 : f32
    %306 = vector.broadcast %cst_100 : f32 to vector<8x256xf32>
    %307 = arith.mulf %306, %305 : vector<8x256xf32>
    %308 = arith.select %2, %305, %307 : vector<8x256xi1>, vector<8x256xf32>
    %309 = arith.negf %308 : vector<8x256xf32>
    %310 = math.exp %309 : vector<8x256xf32>
    %cst_101 = arith.constant 1.000000e+00 : f32
    %311 = vector.broadcast %cst_101 : f32 to vector<8x256xf32>
    %312 = arith.addf %311, %310 : vector<8x256xf32>
    %313 = arith.divf %311, %312 : vector<8x256xf32>
    %cst_102 = arith.constant 2.000000e+00 : f32
    %314 = vector.broadcast %cst_102 : f32 to vector<8x256xf32>
    %315 = arith.mulf %314, %313 : vector<8x256xf32>
    %cst_103 = arith.constant 1.000000e+00 : f32
    %316 = vector.broadcast %cst_103 : f32 to vector<8x256xf32>
    %317 = arith.subf %315, %316 : vector<8x256xf32>
    %318 = arith.select %2, %313, %317 : vector<8x256xi1>, vector<8x256xf32>
    %319 = vector.extract_strided_slice %318 {offsets = [0, 0], sizes = [8, 64], strides = [1, 1]} : vector<8x256xf32> to vector<8x64xf32>
    %320 = vector.extract_strided_slice %318 {offsets = [0, 64], sizes = [8, 64], strides = [1, 1]} : vector<8x256xf32> to vector<8x64xf32>
    %321 = vector.extract_strided_slice %318 {offsets = [0, 128], sizes = [8, 64], strides = [1, 1]} : vector<8x256xf32> to vector<8x64xf32>
    %322 = vector.extract_strided_slice %318 {offsets = [0, 192], sizes = [8, 64], strides = [1, 1]} : vector<8x256xf32> to vector<8x64xf32>
    %323 = arith.mulf %320, %27 : vector<8x64xf32>
    %324 = arith.mulf %319, %322 : vector<8x64xf32>
    %325 = arith.addf %323, %324 : vector<8x64xf32>
    %326 = math.tanh %325 : vector<8x64xf32>
    %327 = arith.mulf %321, %326 : vector<8x64xf32>
    %328 = vector.extract_strided_slice %298 {offsets = [8, 0], sizes = [8, 256], strides = [1, 1]} : vector<64x256xf32> to vector<8x256xf32>
    %329 = vector.extract_strided_slice %298 {offsets = [48, 0], sizes = [8, 256], strides = [1, 1]} : vector<64x256xf32> to vector<8x256xf32>
    %330 = arith.select %20, %328, %329 : vector<8x256xi1>, vector<8x256xf32>
    %331 = arith.truncf %327 : vector<8x64xf32> to vector<8x64xbf16>
    %c0_104 = arith.constant 0 : index
    %c0_105 = arith.constant 0 : index
    %332 = vector.load %arg6[%c0_104, %c0_105] : memref<64x256xbf16, #tpu.memory_space<vmem>>, vector<64x256xbf16>
    %cst_106 = arith.constant dense<0.000000e+00> : vector<8x256xf32>
    %333 = tpu.matmul %331, %332, %cst_106 {dimension_numbers = #tpu.dot_dimension_numbers<[1], [0], [0], [1], [0, 0, 1, 1], [], []>} : vector<8x64xbf16>, vector<64x256xbf16>, vector<8x256xf32> -> vector<8x256xf32>
    %334 = arith.addf %330, %333 : vector<8x256xf32>
    %cst_107 = arith.constant 2.000000e+00 : f32
    %335 = vector.broadcast %cst_107 : f32 to vector<8x256xf32>
    %336 = arith.mulf %335, %334 : vector<8x256xf32>
    %337 = arith.select %2, %334, %336 : vector<8x256xi1>, vector<8x256xf32>
    %338 = arith.negf %337 : vector<8x256xf32>
    %339 = math.exp %338 : vector<8x256xf32>
    %cst_108 = arith.constant 1.000000e+00 : f32
    %340 = vector.broadcast %cst_108 : f32 to vector<8x256xf32>
    %341 = arith.addf %340, %339 : vector<8x256xf32>
    %342 = arith.divf %340, %341 : vector<8x256xf32>
    %cst_109 = arith.constant 2.000000e+00 : f32
    %343 = vector.broadcast %cst_109 : f32 to vector<8x256xf32>
    %344 = arith.mulf %343, %342 : vector<8x256xf32>
    %cst_110 = arith.constant 1.000000e+00 : f32
    %345 = vector.broadcast %cst_110 : f32 to vector<8x256xf32>
    %346 = arith.subf %344, %345 : vector<8x256xf32>
    %347 = arith.select %2, %342, %346 : vector<8x256xi1>, vector<8x256xf32>
    %348 = vector.extract_strided_slice %347 {offsets = [0, 0], sizes = [8, 64], strides = [1, 1]} : vector<8x256xf32> to vector<8x64xf32>
    %349 = vector.extract_strided_slice %347 {offsets = [0, 64], sizes = [8, 64], strides = [1, 1]} : vector<8x256xf32> to vector<8x64xf32>
    %350 = vector.extract_strided_slice %347 {offsets = [0, 128], sizes = [8, 64], strides = [1, 1]} : vector<8x256xf32> to vector<8x64xf32>
    %351 = vector.extract_strided_slice %347 {offsets = [0, 192], sizes = [8, 64], strides = [1, 1]} : vector<8x256xf32> to vector<8x64xf32>
    %352 = arith.mulf %349, %325 : vector<8x64xf32>
    %353 = arith.mulf %348, %351 : vector<8x64xf32>
    %354 = arith.addf %352, %353 : vector<8x64xf32>
    %355 = math.tanh %354 : vector<8x64xf32>
    %356 = arith.mulf %350, %355 : vector<8x64xf32>
    %357 = vector.extract_strided_slice %298 {offsets = [16, 0], sizes = [8, 256], strides = [1, 1]} : vector<64x256xf32> to vector<8x256xf32>
    %358 = vector.extract_strided_slice %298 {offsets = [40, 0], sizes = [8, 256], strides = [1, 1]} : vector<64x256xf32> to vector<8x256xf32>
    %359 = arith.select %20, %357, %358 : vector<8x256xi1>, vector<8x256xf32>
    %360 = arith.truncf %356 : vector<8x64xf32> to vector<8x64xbf16>
    %c0_111 = arith.constant 0 : index
    %c0_112 = arith.constant 0 : index
    %361 = vector.load %arg6[%c0_111, %c0_112] : memref<64x256xbf16, #tpu.memory_space<vmem>>, vector<64x256xbf16>
    %cst_113 = arith.constant dense<0.000000e+00> : vector<8x256xf32>
    %362 = tpu.matmul %360, %361, %cst_113 {dimension_numbers = #tpu.dot_dimension_numbers<[1], [0], [0], [1], [0, 0, 1, 1], [], []>} : vector<8x64xbf16>, vector<64x256xbf16>, vector<8x256xf32> -> vector<8x256xf32>
    %363 = arith.addf %359, %362 : vector<8x256xf32>
    %cst_114 = arith.constant 2.000000e+00 : f32
    %364 = vector.broadcast %cst_114 : f32 to vector<8x256xf32>
    %365 = arith.mulf %364, %363 : vector<8x256xf32>
    %366 = arith.select %2, %363, %365 : vector<8x256xi1>, vector<8x256xf32>
    %367 = arith.negf %366 : vector<8x256xf32>
    %368 = math.exp %367 : vector<8x256xf32>
    %cst_115 = arith.constant 1.000000e+00 : f32
    %369 = vector.broadcast %cst_115 : f32 to vector<8x256xf32>
    %370 = arith.addf %369, %368 : vector<8x256xf32>
    %371 = arith.divf %369, %370 : vector<8x256xf32>
    %cst_116 = arith.constant 2.000000e+00 : f32
    %372 = vector.broadcast %cst_116 : f32 to vector<8x256xf32>
    %373 = arith.mulf %372, %371 : vector<8x256xf32>
    %cst_117 = arith.constant 1.000000e+00 : f32
    %374 = vector.broadcast %cst_117 : f32 to vector<8x256xf32>
    %375 = arith.subf %373, %374 : vector<8x256xf32>
    %376 = arith.select %2, %371, %375 : vector<8x256xi1>, vector<8x256xf32>
    %377 = vector.extract_strided_slice %376 {offsets = [0, 0], sizes = [8, 64], strides = [1, 1]} : vector<8x256xf32> to vector<8x64xf32>
    %378 = vector.extract_strided_slice %376 {offsets = [0, 64], sizes = [8, 64], strides = [1, 1]} : vector<8x256xf32> to vector<8x64xf32>
    %379 = vector.extract_strided_slice %376 {offsets = [0, 128], sizes = [8, 64], strides = [1, 1]} : vector<8x256xf32> to vector<8x64xf32>
    %380 = vector.extract_strided_slice %376 {offsets = [0, 192], sizes = [8, 64], strides = [1, 1]} : vector<8x256xf32> to vector<8x64xf32>
    %381 = arith.mulf %378, %354 : vector<8x64xf32>
    %382 = arith.mulf %377, %380 : vector<8x64xf32>
    %383 = arith.addf %381, %382 : vector<8x64xf32>
    %384 = math.tanh %383 : vector<8x64xf32>
    %385 = arith.mulf %379, %384 : vector<8x64xf32>
    %386 = vector.extract_strided_slice %298 {offsets = [24, 0], sizes = [8, 256], strides = [1, 1]} : vector<64x256xf32> to vector<8x256xf32>
    %387 = vector.extract_strided_slice %298 {offsets = [32, 0], sizes = [8, 256], strides = [1, 1]} : vector<64x256xf32> to vector<8x256xf32>
    %388 = arith.select %20, %386, %387 : vector<8x256xi1>, vector<8x256xf32>
    %389 = arith.truncf %385 : vector<8x64xf32> to vector<8x64xbf16>
    %c0_118 = arith.constant 0 : index
    %c0_119 = arith.constant 0 : index
    %390 = vector.load %arg6[%c0_118, %c0_119] : memref<64x256xbf16, #tpu.memory_space<vmem>>, vector<64x256xbf16>
    %cst_120 = arith.constant dense<0.000000e+00> : vector<8x256xf32>
    %391 = tpu.matmul %389, %390, %cst_120 {dimension_numbers = #tpu.dot_dimension_numbers<[1], [0], [0], [1], [0, 0, 1, 1], [], []>} : vector<8x64xbf16>, vector<64x256xbf16>, vector<8x256xf32> -> vector<8x256xf32>
    %392 = arith.addf %388, %391 : vector<8x256xf32>
    %cst_121 = arith.constant 2.000000e+00 : f32
    %393 = vector.broadcast %cst_121 : f32 to vector<8x256xf32>
    %394 = arith.mulf %393, %392 : vector<8x256xf32>
    %395 = arith.select %2, %392, %394 : vector<8x256xi1>, vector<8x256xf32>
    %396 = arith.negf %395 : vector<8x256xf32>
    %397 = math.exp %396 : vector<8x256xf32>
    %cst_122 = arith.constant 1.000000e+00 : f32
    %398 = vector.broadcast %cst_122 : f32 to vector<8x256xf32>
    %399 = arith.addf %398, %397 : vector<8x256xf32>
    %400 = arith.divf %398, %399 : vector<8x256xf32>
    %cst_123 = arith.constant 2.000000e+00 : f32
    %401 = vector.broadcast %cst_123 : f32 to vector<8x256xf32>
    %402 = arith.mulf %401, %400 : vector<8x256xf32>
    %cst_124 = arith.constant 1.000000e+00 : f32
    %403 = vector.broadcast %cst_124 : f32 to vector<8x256xf32>
    %404 = arith.subf %402, %403 : vector<8x256xf32>
    %405 = arith.select %2, %400, %404 : vector<8x256xi1>, vector<8x256xf32>
    %406 = vector.extract_strided_slice %405 {offsets = [0, 0], sizes = [8, 64], strides = [1, 1]} : vector<8x256xf32> to vector<8x64xf32>
    %407 = vector.extract_strided_slice %405 {offsets = [0, 64], sizes = [8, 64], strides = [1, 1]} : vector<8x256xf32> to vector<8x64xf32>
    %408 = vector.extract_strided_slice %405 {offsets = [0, 128], sizes = [8, 64], strides = [1, 1]} : vector<8x256xf32> to vector<8x64xf32>
    %409 = vector.extract_strided_slice %405 {offsets = [0, 192], sizes = [8, 64], strides = [1, 1]} : vector<8x256xf32> to vector<8x64xf32>
    %410 = arith.mulf %407, %383 : vector<8x64xf32>
    %411 = arith.mulf %406, %409 : vector<8x64xf32>
    %412 = arith.addf %410, %411 : vector<8x64xf32>
    %413 = math.tanh %412 : vector<8x64xf32>
    %414 = arith.mulf %408, %413 : vector<8x64xf32>
    %415 = vector.extract_strided_slice %298 {offsets = [32, 0], sizes = [8, 256], strides = [1, 1]} : vector<64x256xf32> to vector<8x256xf32>
    %416 = vector.extract_strided_slice %298 {offsets = [24, 0], sizes = [8, 256], strides = [1, 1]} : vector<64x256xf32> to vector<8x256xf32>
    %417 = arith.select %20, %415, %416 : vector<8x256xi1>, vector<8x256xf32>
    %418 = arith.truncf %414 : vector<8x64xf32> to vector<8x64xbf16>
    %c0_125 = arith.constant 0 : index
    %c0_126 = arith.constant 0 : index
    %419 = vector.load %arg6[%c0_125, %c0_126] : memref<64x256xbf16, #tpu.memory_space<vmem>>, vector<64x256xbf16>
    %cst_127 = arith.constant dense<0.000000e+00> : vector<8x256xf32>
    %420 = tpu.matmul %418, %419, %cst_127 {dimension_numbers = #tpu.dot_dimension_numbers<[1], [0], [0], [1], [0, 0, 1, 1], [], []>} : vector<8x64xbf16>, vector<64x256xbf16>, vector<8x256xf32> -> vector<8x256xf32>
    %421 = arith.addf %417, %420 : vector<8x256xf32>
    %cst_128 = arith.constant 2.000000e+00 : f32
    %422 = vector.broadcast %cst_128 : f32 to vector<8x256xf32>
    %423 = arith.mulf %422, %421 : vector<8x256xf32>
    %424 = arith.select %2, %421, %423 : vector<8x256xi1>, vector<8x256xf32>
    %425 = arith.negf %424 : vector<8x256xf32>
    %426 = math.exp %425 : vector<8x256xf32>
    %cst_129 = arith.constant 1.000000e+00 : f32
    %427 = vector.broadcast %cst_129 : f32 to vector<8x256xf32>
    %428 = arith.addf %427, %426 : vector<8x256xf32>
    %429 = arith.divf %427, %428 : vector<8x256xf32>
    %cst_130 = arith.constant 2.000000e+00 : f32
    %430 = vector.broadcast %cst_130 : f32 to vector<8x256xf32>
    %431 = arith.mulf %430, %429 : vector<8x256xf32>
    %cst_131 = arith.constant 1.000000e+00 : f32
    %432 = vector.broadcast %cst_131 : f32 to vector<8x256xf32>
    %433 = arith.subf %431, %432 : vector<8x256xf32>
    %434 = arith.select %2, %429, %433 : vector<8x256xi1>, vector<8x256xf32>
    %435 = vector.extract_strided_slice %434 {offsets = [0, 0], sizes = [8, 64], strides = [1, 1]} : vector<8x256xf32> to vector<8x64xf32>
    %436 = vector.extract_strided_slice %434 {offsets = [0, 64], sizes = [8, 64], strides = [1, 1]} : vector<8x256xf32> to vector<8x64xf32>
    %437 = vector.extract_strided_slice %434 {offsets = [0, 128], sizes = [8, 64], strides = [1, 1]} : vector<8x256xf32> to vector<8x64xf32>
    %438 = vector.extract_strided_slice %434 {offsets = [0, 192], sizes = [8, 64], strides = [1, 1]} : vector<8x256xf32> to vector<8x64xf32>
    %439 = arith.mulf %436, %412 : vector<8x64xf32>
    %440 = arith.mulf %435, %438 : vector<8x64xf32>
    %441 = arith.addf %439, %440 : vector<8x64xf32>
    %442 = math.tanh %441 : vector<8x64xf32>
    %443 = arith.mulf %437, %442 : vector<8x64xf32>
    %444 = vector.extract_strided_slice %298 {offsets = [40, 0], sizes = [8, 256], strides = [1, 1]} : vector<64x256xf32> to vector<8x256xf32>
    %445 = vector.extract_strided_slice %298 {offsets = [16, 0], sizes = [8, 256], strides = [1, 1]} : vector<64x256xf32> to vector<8x256xf32>
    %446 = arith.select %20, %444, %445 : vector<8x256xi1>, vector<8x256xf32>
    %447 = arith.truncf %443 : vector<8x64xf32> to vector<8x64xbf16>
    %c0_132 = arith.constant 0 : index
    %c0_133 = arith.constant 0 : index
    %448 = vector.load %arg6[%c0_132, %c0_133] : memref<64x256xbf16, #tpu.memory_space<vmem>>, vector<64x256xbf16>
    %cst_134 = arith.constant dense<0.000000e+00> : vector<8x256xf32>
    %449 = tpu.matmul %447, %448, %cst_134 {dimension_numbers = #tpu.dot_dimension_numbers<[1], [0], [0], [1], [0, 0, 1, 1], [], []>} : vector<8x64xbf16>, vector<64x256xbf16>, vector<8x256xf32> -> vector<8x256xf32>
    %450 = arith.addf %446, %449 : vector<8x256xf32>
    %cst_135 = arith.constant 2.000000e+00 : f32
    %451 = vector.broadcast %cst_135 : f32 to vector<8x256xf32>
    %452 = arith.mulf %451, %450 : vector<8x256xf32>
    %453 = arith.select %2, %450, %452 : vector<8x256xi1>, vector<8x256xf32>
    %454 = arith.negf %453 : vector<8x256xf32>
    %455 = math.exp %454 : vector<8x256xf32>
    %cst_136 = arith.constant 1.000000e+00 : f32
    %456 = vector.broadcast %cst_136 : f32 to vector<8x256xf32>
    %457 = arith.addf %456, %455 : vector<8x256xf32>
    %458 = arith.divf %456, %457 : vector<8x256xf32>
    %cst_137 = arith.constant 2.000000e+00 : f32
    %459 = vector.broadcast %cst_137 : f32 to vector<8x256xf32>
    %460 = arith.mulf %459, %458 : vector<8x256xf32>
    %cst_138 = arith.constant 1.000000e+00 : f32
    %461 = vector.broadcast %cst_138 : f32 to vector<8x256xf32>
    %462 = arith.subf %460, %461 : vector<8x256xf32>
    %463 = arith.select %2, %458, %462 : vector<8x256xi1>, vector<8x256xf32>
    %464 = vector.extract_strided_slice %463 {offsets = [0, 0], sizes = [8, 64], strides = [1, 1]} : vector<8x256xf32> to vector<8x64xf32>
    %465 = vector.extract_strided_slice %463 {offsets = [0, 64], sizes = [8, 64], strides = [1, 1]} : vector<8x256xf32> to vector<8x64xf32>
    %466 = vector.extract_strided_slice %463 {offsets = [0, 128], sizes = [8, 64], strides = [1, 1]} : vector<8x256xf32> to vector<8x64xf32>
    %467 = vector.extract_strided_slice %463 {offsets = [0, 192], sizes = [8, 64], strides = [1, 1]} : vector<8x256xf32> to vector<8x64xf32>
    %468 = arith.mulf %465, %441 : vector<8x64xf32>
    %469 = arith.mulf %464, %467 : vector<8x64xf32>
    %470 = arith.addf %468, %469 : vector<8x64xf32>
    %471 = math.tanh %470 : vector<8x64xf32>
    %472 = arith.mulf %466, %471 : vector<8x64xf32>
    %473 = vector.extract_strided_slice %298 {offsets = [48, 0], sizes = [8, 256], strides = [1, 1]} : vector<64x256xf32> to vector<8x256xf32>
    %474 = vector.extract_strided_slice %298 {offsets = [8, 0], sizes = [8, 256], strides = [1, 1]} : vector<64x256xf32> to vector<8x256xf32>
    %475 = arith.select %20, %473, %474 : vector<8x256xi1>, vector<8x256xf32>
    %476 = arith.truncf %472 : vector<8x64xf32> to vector<8x64xbf16>
    %c0_139 = arith.constant 0 : index
    %c0_140 = arith.constant 0 : index
    %477 = vector.load %arg6[%c0_139, %c0_140] : memref<64x256xbf16, #tpu.memory_space<vmem>>, vector<64x256xbf16>
    %cst_141 = arith.constant dense<0.000000e+00> : vector<8x256xf32>
    %478 = tpu.matmul %476, %477, %cst_141 {dimension_numbers = #tpu.dot_dimension_numbers<[1], [0], [0], [1], [0, 0, 1, 1], [], []>} : vector<8x64xbf16>, vector<64x256xbf16>, vector<8x256xf32> -> vector<8x256xf32>
    %479 = arith.addf %475, %478 : vector<8x256xf32>
    %cst_142 = arith.constant 2.000000e+00 : f32
    %480 = vector.broadcast %cst_142 : f32 to vector<8x256xf32>
    %481 = arith.mulf %480, %479 : vector<8x256xf32>
    %482 = arith.select %2, %479, %481 : vector<8x256xi1>, vector<8x256xf32>
    %483 = arith.negf %482 : vector<8x256xf32>
    %484 = math.exp %483 : vector<8x256xf32>
    %cst_143 = arith.constant 1.000000e+00 : f32
    %485 = vector.broadcast %cst_143 : f32 to vector<8x256xf32>
    %486 = arith.addf %485, %484 : vector<8x256xf32>
    %487 = arith.divf %485, %486 : vector<8x256xf32>
    %cst_144 = arith.constant 2.000000e+00 : f32
    %488 = vector.broadcast %cst_144 : f32 to vector<8x256xf32>
    %489 = arith.mulf %488, %487 : vector<8x256xf32>
    %cst_145 = arith.constant 1.000000e+00 : f32
    %490 = vector.broadcast %cst_145 : f32 to vector<8x256xf32>
    %491 = arith.subf %489, %490 : vector<8x256xf32>
    %492 = arith.select %2, %487, %491 : vector<8x256xi1>, vector<8x256xf32>
    %493 = vector.extract_strided_slice %492 {offsets = [0, 0], sizes = [8, 64], strides = [1, 1]} : vector<8x256xf32> to vector<8x64xf32>
    %494 = vector.extract_strided_slice %492 {offsets = [0, 64], sizes = [8, 64], strides = [1, 1]} : vector<8x256xf32> to vector<8x64xf32>
    %495 = vector.extract_strided_slice %492 {offsets = [0, 128], sizes = [8, 64], strides = [1, 1]} : vector<8x256xf32> to vector<8x64xf32>
    %496 = vector.extract_strided_slice %492 {offsets = [0, 192], sizes = [8, 64], strides = [1, 1]} : vector<8x256xf32> to vector<8x64xf32>
    %497 = arith.mulf %494, %470 : vector<8x64xf32>
    %498 = arith.mulf %493, %496 : vector<8x64xf32>
    %499 = arith.addf %497, %498 : vector<8x64xf32>
    %500 = math.tanh %499 : vector<8x64xf32>
    %501 = arith.mulf %495, %500 : vector<8x64xf32>
    %502 = vector.extract_strided_slice %298 {offsets = [56, 0], sizes = [8, 256], strides = [1, 1]} : vector<64x256xf32> to vector<8x256xf32>
    %503 = vector.extract_strided_slice %298 {offsets = [0, 0], sizes = [8, 256], strides = [1, 1]} : vector<64x256xf32> to vector<8x256xf32>
    %504 = arith.select %20, %502, %503 : vector<8x256xi1>, vector<8x256xf32>
    %505 = arith.truncf %501 : vector<8x64xf32> to vector<8x64xbf16>
    %c0_146 = arith.constant 0 : index
    %c0_147 = arith.constant 0 : index
    %506 = vector.load %arg6[%c0_146, %c0_147] : memref<64x256xbf16, #tpu.memory_space<vmem>>, vector<64x256xbf16>
    %cst_148 = arith.constant dense<0.000000e+00> : vector<8x256xf32>
    %507 = tpu.matmul %505, %506, %cst_148 {dimension_numbers = #tpu.dot_dimension_numbers<[1], [0], [0], [1], [0, 0, 1, 1], [], []>} : vector<8x64xbf16>, vector<64x256xbf16>, vector<8x256xf32> -> vector<8x256xf32>
    %508 = arith.addf %504, %507 : vector<8x256xf32>
    %cst_149 = arith.constant 2.000000e+00 : f32
    %509 = vector.broadcast %cst_149 : f32 to vector<8x256xf32>
    %510 = arith.mulf %509, %508 : vector<8x256xf32>
    %511 = arith.select %2, %508, %510 : vector<8x256xi1>, vector<8x256xf32>
    %512 = arith.negf %511 : vector<8x256xf32>
    %513 = math.exp %512 : vector<8x256xf32>
    %cst_150 = arith.constant 1.000000e+00 : f32
    %514 = vector.broadcast %cst_150 : f32 to vector<8x256xf32>
    %515 = arith.addf %514, %513 : vector<8x256xf32>
    %516 = arith.divf %514, %515 : vector<8x256xf32>
    %cst_151 = arith.constant 2.000000e+00 : f32
    %517 = vector.broadcast %cst_151 : f32 to vector<8x256xf32>
    %518 = arith.mulf %517, %516 : vector<8x256xf32>
    %cst_152 = arith.constant 1.000000e+00 : f32
    %519 = vector.broadcast %cst_152 : f32 to vector<8x256xf32>
    %520 = arith.subf %518, %519 : vector<8x256xf32>
    %521 = arith.select %2, %516, %520 : vector<8x256xi1>, vector<8x256xf32>
    %522 = vector.extract_strided_slice %521 {offsets = [0, 0], sizes = [8, 64], strides = [1, 1]} : vector<8x256xf32> to vector<8x64xf32>
    %523 = vector.extract_strided_slice %521 {offsets = [0, 64], sizes = [8, 64], strides = [1, 1]} : vector<8x256xf32> to vector<8x64xf32>
    %524 = vector.extract_strided_slice %521 {offsets = [0, 128], sizes = [8, 64], strides = [1, 1]} : vector<8x256xf32> to vector<8x64xf32>
    %525 = vector.extract_strided_slice %521 {offsets = [0, 192], sizes = [8, 64], strides = [1, 1]} : vector<8x256xf32> to vector<8x64xf32>
    %526 = arith.mulf %523, %499 : vector<8x64xf32>
    %527 = arith.mulf %522, %525 : vector<8x64xf32>
    %528 = arith.addf %526, %527 : vector<8x64xf32>
    %529 = math.tanh %528 : vector<8x64xf32>
    %530 = arith.mulf %524, %529 : vector<8x64xf32>
    %c0_153 = arith.constant 0 : index
    %c0_154 = arith.constant 0 : index
    %531 = vector.load %arg7[%c0_153, %c0_154] : memref<64x4xf32, #tpu.memory_space<vmem>>, vector<64x4xf32>
    %cst_155 = arith.constant dense<0.000000e+00> : vector<8x4xf32>
    %532 = tpu.matmul %530, %531, %cst_155 {dimension_numbers = #tpu.dot_dimension_numbers<[1], [0], [0], [1], [0, 0, 1, 1], [], []>} : vector<8x64xf32>, vector<64x4xf32>, vector<8x4xf32> -> vector<8x4xf32>
    %c0_156 = arith.constant 0 : index
    %c0_157 = arith.constant 0 : index
    %533 = vector.load %arg8[%c0_156, %c0_157] : memref<1x4xf32, #tpu.memory_space<vmem>>, vector<1x4xf32>
    %534 = vector.broadcast %533 : vector<1x4xf32> to vector<8x4xf32>
    %535 = arith.addf %532, %534 : vector<8x4xf32>
    %c0_158 = arith.constant 0 : index
    %c0_159 = arith.constant 0 : index
    %536 = vector.load %arg9[%c0_158, %c0_159] : memref<8x4xf32, #tpu.memory_space<vmem>>, vector<8x4xf32>
    tpu.vector_store %arg9[%c0_158, %c0_159], %535 {strides = array<i32>} : memref<8x4xf32, #tpu.memory_space<vmem>>, vector<8x4xf32>,
    return
  }
}

</mosaic_0001>

<bundles_post_ra>
// kernel: lstm_model_forward.1
= control target key start
LH: loop header
LB: loop body
LE: loop exit
PB: predicated region body
PF: predicated region fallthrough
CT: control target
= control target key end

     0   :  { %v2716_v1 = vmov 0   ;;  %vm116_vm0 = vcmask 130048   ;;  %v33_v15 = vlaneseq  ;;  %vm338_vm4 = vcmask 261120   ;;  %s3581_s1 = inlined_call_operand.vmem [shape: bf16[16,256], index: 1, kind: input, shape index: {}]   ;;  %s3582_s0 = inlined_call_operand.vmem [shape: bf16[64,16], index: 0, kind: input, shape index: {}]   ;;  %s3583_s3 = inlined_call_operand.vmem [shape: bf16[64,256], index: 3, kind: input, shape index: {}]   ;;  %s3584_s2 = inlined_call_operand.vmem [shape: f32[1,256], index: 2, kind: input, shape index: {}]   ;;  %s3585_s4 = inlined_call_operand.vmem [shape: bf16[64,256], index: 4, kind: input, shape index: {}]   ;;  %s3586_s6 = inlined_call_operand.vmem [shape: bf16[64,256], index: 6, kind: input, shape index: {}]   ;;  %s3587_s5 = inlined_call_operand.vmem [shape: f32[1,256], index: 5, kind: input, shape index: {}]   ;;  %s3588_s7 = inlined_call_operand.vmem [shape: f32[64,4], index: 7, kind: input, shape index: {}]   ;;  %s3589_s8 = inlined_call_operand.vmem [shape: f32[1,4], index: 8, kind: input, shape index: {}]   ;;  %s3590_s9 = inlined_call_operand.vmem [shape: f32[8,4], index: 9, kind: output, shape index: {}]  }
   0x1   :  { %v2513_v0 = vld [vmem:[%s3581_s1 + $0x4] ss:$8 sps:$4 sm:$0xff]   ;;  %161 = vmatprep.mubr.bf16.mxu0 %v2716_v1  ;;  %288 = vmatprep.mubr.bf16.mxu1 %v2716_v1  ;;  %v2515_v2 = vld [vmem:[%s3581_s1] ss:$8 sps:$4 sm:$0xff]   ;;  %v2784_v4 = vld [vmem:[%s3583_s3 + $0x34] ss:$8 sps:$4 sm:$0xff]  }
   0x2   :  { %143 = vmatprep.subr.bf16.mxu0 %v2513_v0  ;;  %v2516_v3 = vld [vmem:[%s3582_s0] sm:$0xff]   ;;  %v2789_v5 = vld [vmem:[%s3583_s3 + $0x30] ss:$8 sps:$4 sm:$0xff]   ;;  %264 = vmatprep.subr.bf16.mxu1 %v2784_v4  ;;  %v2809_v8 = vld [vmem:[%s3583_s3 + $0x14] ss:$8 sps:$4 sm:$0xff]   ;;  %v2866_v16 = vshrl.u32 %v33_v15, 7 }
   0x3   :  { %144 = vmatpush1.bf16.msra.mxu0 %v2515_v2  ;;  %v2794_v6 = vld [vmem:[%s3583_s3 + $0x24] ss:$8 sps:$4 sm:$0xff]   ;;  %265 = vmatpush1.bf16.msra.mxu1 %v2789_v5  ;;  %v2803_v7 = vld [vmem:[%s3583_s3 + $0x20] ss:$8 sps:$4 sm:$0xff]   ;;  %v2821_v10 = vld [vmem:[%s3583_s3 + $0x10] ss:$8 sps:$4 sm:$0xff]  }
   0x4   :  { %266 = vmatprep.subr.bf16.mxu1 %v2794_v6  ;;  %542 = vmatprep.subr.bf16.mxu0 %v2784_v4  ;;  %v2517_v9 = vld [vmem:[%s3582_s0 + $0x8] sm:$0xff]   ;;  %v2524_v13 = vld [vmem:[%s3582_s0 + $0x10] sm:$0xff]   ;;  %v2531_v14 = vld [vmem:[%s3582_s0 + $0x18] sm:$0xff]   ;;  %v78_v17 = vsub.s32 0, %v2866_v16  ;;  %v82_v22 = vsub.s32 1, %v2866_v16  ;;  %v34_v27 = vand.u32 127, %v33_v15 }
   0x5   :  { %v2827_v11 = vld [vmem:[%s3583_s3 + $0x4] ss:$8 sps:$4 sm:$0xff]   ;;  %v2837_v12 = vld [vmem:[%s3583_s3] ss:$8 sps:$4 sm:$0xff]   ;;  %vm340_vm5 = vcmask 523520   ;;  %vm252_vm6 = vcmask 523264  }
   0x6   :  { %2313 = vmatmul.mubr.msk.bf16.vlgmr.msra.gmra.mxu0 %vm116_vm0, %v2516_v3  ;;  %v74_v18 = vld [vmem:[%s3584_s2] sm:$0x3]  ;;  %v2885_v32 = vadd.s32 128, %v34_v27  ;;  %v42_v35 = vand.u32 63, %v34_v27  ;;  %s2717_s2 = smov 64   ;;  %vm2719_vm7 = vmmov 0  }
   0x7   :  { %171 = vmatprep.mubr.bf16.mxu0 %v2716_v1  ;;  %543 = vmatpush1.bf16.msra.mxu0 %v2789_v5  ;;  %v79_v19 = vrot.slane %v74_v18, %v78_v17  ;;  %v83_v25 = vrot.slane %v74_v18, %v82_v22  ;;  %vm2301_vm8 = vcmask 31744  }
   0x8   :  { %544 = vmatprep.subr.bf16.mxu0 %v2794_v6  ;;  %267 = vmatpush1.bf16.msra.mxu1 %v2803_v7  ;;  %v49_v38 = vand.u32 63, %v2885_v32  ;;  %vm2894_vm1 = vcmp.lt.s32.totalorder %v42_v35, 32  ;;  %vm37_vm3 = vcmp.lt.s32.totalorder %v2885_v32, 192  ;;  %v2219_v32 = vld [vmem:[%s3588_s7 + $0x30] sm:$0xff] }
   0x9   :  { %268 = vmatprep.subr.bf16.mxu1 %v2809_v8 }
   0xa   :  { %vm2900_vm2 = vcmp.lt.s32.totalorder %v49_v38, 32 }
   0xb   :  { %545 = vmatpush1.bf16.msra.mxu0 %v2803_v7 }
   0xc   :  { %546 = vmatprep.subr.bf16.mxu0 %v2809_v8  ;;  %269 = vmatpush1.bf16.msra.mxu1 %v2821_v10 }
   0xd   :  { %270 = vmatprep.subr.bf16.mxu1 %v2827_v11 }
   0xe   :  { %2314 = vmatmul.mubr.msk.bf16.gmra.mxu0 %vm116_vm0, %v2517_v9 }
   0xf   :  { %181 = vmatprep.mubr.bf16.mxu0 %v2716_v1  ;;  %547 = vmatpush1.bf16.msra.mxu0 %v2821_v10 }
  0x10   :  { %548 = vmatprep.subr.bf16.mxu0 %v2827_v11  ;;  %271 = vmatpush1.bf16.msra.mxu1 %v2837_v12 }
  0x11   :  { %404 = vmatprep.subr.bf16.mxu1 %v2784_v4 }
  0x13   :  { %549 = vmatpush1.bf16.msra.mxu0 %v2837_v12  ;;  %289 = vmatmul.mubr.bf16.vlgmr.msra.gmra.mxu1 %v2716_v1 }
  0x14   :  { %405 = vmatpush1.bf16.msra.mxu1 %v2789_v5  ;;  %428 = vmatprep.mubr.bf16.mxu1 %v2716_v1 }
  0x15   :  { %406 = vmatprep.subr.bf16.mxu1 %v2794_v6  ;;  %818 = vmatprep.subr.bf16.mxu0 %v2784_v4 }
  0x16   :  { %2315 = vmatmul.mubr.msk.bf16.gmra.mxu0 %vm116_vm0, %v2524_v13 }
  0x17   :  { %191 = vmatprep.mubr.bf16.mxu0 %v2716_v1 }
  0x18   :  { %407 = vmatpush1.bf16.msra.mxu1 %v2803_v7 }
  0x19   :  { %408 = vmatprep.subr.bf16.mxu1 %v2809_v8 }
  0x1c   :  { %409 = vmatpush1.bf16.msra.mxu1 %v2821_v10 }
  0x1d   :  { %410 = vmatprep.subr.bf16.mxu1 %v2827_v11 }
  0x1e   :  { %2316 = vmatmul.mubr.msk.bf16.gmra.mxu0 %vm116_vm0, %v2531_v14 }
  0x1f   :  { %566 = vmatprep.mubr.bf16.mxu0 %v2716_v1 }
  0x20   :  { %411 = vmatpush1.bf16.msra.mxu1 %v2837_v12 }
  0x21   :  { %680 = vmatprep.subr.bf16.mxu1 %v2784_v4 }
  0xc6   :  { %v163_v20 = vpop.f32.mrf.mxu0 }
  0xc7   :  { %v2874_v21 = vadd.f32 %v163_v20, %v79_v19 }
  0xc8   :  { %v165_v23 = vpop.f32.mrf.mxu0 }
  0xc9   :  { %v2964_v27 = vadd.f32 %v165_v23, %v83_v25 }
  0xca   :  { %v167_v24 = vpop.f32.mrf.mxu0 }
  0xcb   :  { %v2879_v26 = vadd.f32 %v167_v24, %v79_v19 }
  0xcc   :  { %v169_v28 = vpop.f32.mrf.mxu0 }
  0xcd   :  { %v2881_v29 = vadd.f32 %v169_v28, %v83_v25 }
  0xce   :  { %v173_v30 = vpop.f32.mrf.mxu0 }
  0xcf   :  { %v2883_v31 = vadd.f32 %v173_v30, %v79_v19 }
  0xd0   :  { %v175_v33 = vpop.f32.mrf.mxu0 }
  0xd1   :  { %v2887_v34 = vadd.f32 %v175_v33, %v83_v25 }
  0xd2   :  { %v177_v36 = vpop.f32.mrf.mxu0 }
  0xd3   :  { %v2889_v37 = vadd.f32 %v177_v36, %v79_v19  ;;  %v290_v43 = vpop.f32.mrf.mxu1 }
  0xd4   :  { %v179_v39 = vpop.f32.mrf.mxu0 }
  0xd5   :  { %v2892_v40 = vadd.f32 %v179_v39, %v83_v25  ;;  %v292_v47 = vpop.f32.mrf.mxu1 }
  0xd6   :  { %v183_v42 = vpop.f32.mrf.mxu0 }
  0xd7   :  { %v2898_v44 = vadd.f32 %v183_v42, %v79_v19  ;;  %v294_v52 = vpop.f32.mrf.mxu1 }
  0xd8   :  { %v185_v46 = vpop.f32.mrf.mxu0 }
  0xd9   :  { %v2904_v48 = vadd.f32 %v185_v46, %v83_v25  ;;  %v618_v49 = vsel %vm2894_vm1, %v2889_v37, %v2898_v44  ;;  %v756_v50 = vsel %vm2894_vm1, %v2898_v44, %v2889_v37  ;;  %v295_v57 = vpop.f32.mrf.mxu1 }
  0xda   :  { %v187_v51 = vpop.f32.mrf.mxu0 }
  0xdb   :  { %v2914_v53 = vadd.f32 %v187_v51, %v79_v19  ;;  %v619_v54 = vsel %vm2900_vm2, %v2892_v40, %v2904_v48  ;;  %v757_v55 = vsel %vm2900_vm2, %v2904_v48, %v2892_v40 }
  0xdc   :  { %v189_v56 = vpop.f32.mrf.mxu0 }
  0xdd   :  { %v2924_v58 = vadd.f32 %v189_v56, %v83_v25  ;;  %v480_v59 = vsel %vm2894_vm1, %v2883_v31, %v2914_v53  ;;  %v894_v60 = vsel %vm2894_vm1, %v2914_v53, %v2883_v31 }
  0xde   :  { %v193_v61 = vpop.f32.mrf.mxu0 }
  0xdf   :  { %v2934_v62 = vadd.f32 %v193_v61, %v79_v19  ;;  %v481_v63 = vsel %vm2900_vm2, %v2887_v34, %v2924_v58  ;;  %v895_v0 = vsel %vm2900_vm2, %v2924_v58, %v2887_v34 }
  0xe0   :  { %v195_v2 = vpop.f32.mrf.mxu0 }
  0xe1   :  { %v2944_v3 = vadd.f32 %v195_v2, %v83_v25  ;;  %v342_v9 = vsel %vm2894_vm1, %v2879_v26, %v2934_v62  ;;  %v1032_v13 = vsel %vm2894_vm1, %v2934_v62, %v2879_v26 }
  0xe2   :  { %v197_v14 = vpop.f32.mrf.mxu0 }
  0xe3   :  { %v2954_v15 = vadd.f32 %v197_v14, %v79_v19  ;;  %v343_v18 = vsel %vm2900_vm2, %v2881_v29, %v2944_v3  ;;  %v1033_v20 = vsel %vm2900_vm2, %v2944_v3, %v2881_v29 }
  0xe4   :  { %v199_v24 = vpop.f32.mrf.mxu0 }
  0xe5   :  { %v202_v28 = vsel %vm2894_vm1, %v2874_v21, %v2954_v15  ;;  %v2970_v19 = vadd.f32 %v199_v24, %v83_v25  ;;  %v1170_v30 = vsel %vm2894_vm1, %v2954_v15, %v2874_v21 }
  0xe6   :  { %v297_v33 = vadd.f32 %v290_v43, %v202_v28 }
  0xe7   :  { %v203_v35 = vsel %vm2900_vm2, %v2964_v27, %v2970_v19  ;;  %v1171_v23 = vsel %vm2900_vm2, %v2970_v19, %v2964_v27 }
  0xe8   :  { %v298_v36 = vadd.f32 %v292_v47, %v203_v35  ;;  %v2325_v47 = vmul.f32 -1.442695, %v297_v33 }
  0xea   :  { %v300_v25 = vmul.f32 2.0, %v298_v36 }
  0xec   :  { %v302_v38 = vsel %vm37_vm3, %v298_v36, %v300_v25 }
  0xed   :  { %v2326_v39 = vmul.f32 -1.442695, %v302_v38 }
  0xef   :  { %2556 = vpow2.f32 %v2326_v39 }
  0xfc   :  { %v2557_v42 = vpop.eup %2556 }
  0xfd   :  { %v310_v43 = vadd.f32 1.0, %v2557_v42 }
  0xff   :  { %2558 = vrcp.f32 %v310_v43 }
 0x100   :  { %2560 = vpow2.f32 %v2325_v47 }
 0x10c   :  { %v2559_v46 = vpop.eup %2558 }
 0x10d   :  { %v316_v51 = vmul.f32 2.0, %v2559_v46  ;;  %v2561_v57 = vpop.eup %2560 }
 0x10e   :  { %v309_v61 = vadd.f32 1.0, %v2561_v57 }
 0x10f   :  { %v2328_v52 = vadd.f32 -1.0, %v316_v51 }
 0x110   :  { %2562 = vrcp.f32 %v309_v61 }
 0x111   :  { %v320_v56 = vsel %vm37_vm3, %v2559_v46, %v2328_v52 }
 0x112   :  { %323 = vrot.lane.b32.xlu0 %v320_v56, %s2717_s2 }
 0x11d   :  { %v2563_v2 = vpop.eup %2562 }
 0x11e   :  { %v321_v28 = vmul.f32 0.0, %v2563_v2 }
 0x184   :  { %v324_v14 = vpop.permute.xlu0 %323 }
 0x185   :  { %v326_v24 = vmul.f32 %v2563_v2, %v324_v14 }
 0x187   :  { %328 = vrot.lane.b32.xlu0 %v326_v24, %s2717_s2 }
 0x1f9   :  { %v329_v35 = vpop.permute.xlu0 %328 }
 0x1fa   :  { %v331_v36 = vadd.f32 %v329_v35, %v321_v28 }
 0x1fc   :  { %2564 = vtanh.f32 %v331_v36 }
 0x209   :  { %v2565_v25 = vpop.eup %2564 }
 0x20a   :  { %334 = vrot.lane.b32.xlu1 %v2565_v25, %s2717_s2 }
 0x27c   :  { %v335_v38 = vpop.permute.xlu1 %334 }
 0x27d   :  { %v337_v33 = vmul.f32 %v335_v38, %v320_v56 }
 0x27f   :  { %339 = vst.msk [vmem:[#allocation2] sm:$0xff] %vm338_vm4, %v337_v33  ;;  %v344_v39 = vpack.c.bf16 %v337_v33, %v337_v33 }
 0x280   :  { %341 = vst.msk [vmem:[#allocation2 + $0x38] sm:$0xff] %vm340_vm5, %v337_v33 }
 0x281   :  { %2337 = vmatmul.mubr.msk.bf16.vlgmr.msra.gmra.mxu1 %vm252_vm6, %v344_v39 }
 0x282   :  { %681 = vmatpush1.bf16.msra.mxu1 %v2789_v5  ;;  %704 = vmatprep.mubr.bf16.mxu1 %v2716_v1 }
 0x283   :  { %682 = vmatprep.subr.bf16.mxu1 %v2794_v6 }
 0x286   :  { %683 = vmatpush1.bf16.msra.mxu1 %v2803_v7 }
 0x287   :  { %684 = vmatprep.subr.bf16.mxu1 %v2809_v8 }
 0x28a   :  { %685 = vmatpush1.bf16.msra.mxu1 %v2821_v10 }
 0x28b   :  { %686 = vmatprep.subr.bf16.mxu1 %v2827_v11 }
 0x28e   :  { %687 = vmatpush1.bf16.msra.mxu1 %v2837_v12 }
 0x28f   :  { %956 = vmatprep.subr.bf16.mxu1 %v2784_v4 }
 0x341   :  { %v430_v42 = vpop.f32.mrf.mxu1 }
 0x342   :  { %v437_v43 = vadd.f32 %v430_v42, %v342_v9 }
 0x343   :  { %v432_v46 = vpop.f32.mrf.mxu1 }
 0x344   :  { %v438_v51 = vadd.f32 %v432_v46, %v343_v18  ;;  %v2338_v9 = vmul.f32 -1.442695, %v437_v43 }
 0x345   :  { %v434_v52 = vpop.f32.mrf.mxu1 }
 0x346   :  { %v440_v56 = vmul.f32 2.0, %v438_v51 }
 0x347   :  { %v435_v47 = vpop.f32.mrf.mxu1 }
 0x348   :  { %v442_v57 = vsel %vm37_vm3, %v438_v51, %v440_v56 }
 0x349   :  { %v2339_v61 = vmul.f32 -1.442695, %v442_v57 }
 0x34b   :  { %2566 = vpow2.f32 %v2339_v61 }
 0x358   :  { %v2567_v2 = vpop.eup %2566 }
 0x359   :  { %v450_v14 = vadd.f32 1.0, %v2567_v2 }
 0x35b   :  { %2568 = vrcp.f32 %v450_v14 }
 0x35c   :  { %2570 = vpow2.f32 %v2338_v9 }
 0x368   :  { %v2569_v24 = vpop.eup %2568 }
 0x369   :  { %v456_v28 = vmul.f32 2.0, %v2569_v24  ;;  %v2571_v18 = vpop.eup %2570 }
 0x36a   :  { %v449_v38 = vadd.f32 1.0, %v2571_v18 }
 0x36b   :  { %v2341_v35 = vadd.f32 -1.0, %v456_v28 }
 0x36c   :  { %2572 = vrcp.f32 %v449_v38 }
 0x36d   :  { %v460_v25 = vsel %vm37_vm3, %v2569_v24, %v2341_v35 }
 0x36e   :  { %463 = vrot.lane.b32.xlu1 %v460_v25, %s2717_s2 }
 0x379   :  { %v2573_v33 = vpop.eup %2572 }
 0x37a   :  { %v461_v46 = vmul.f32 %v2573_v33, %v331_v36 }
 0x3e0   :  { %v464_v39 = vpop.permute.xlu1 %463 }
 0x3e1   :  { %v466_v42 = vmul.f32 %v2573_v33, %v464_v39 }
 0x3e3   :  { %468 = vrot.lane.b32.xlu0 %v466_v42, %s2717_s2 }
 0x455   :  { %v469_v51 = vpop.permute.xlu0 %468 }
 0x456   :  { %v471_v52 = vadd.f32 %v469_v51, %v461_v46 }
 0x458   :  { %2574 = vtanh.f32 %v471_v52 }
 0x465   :  { %v2575_v56 = vpop.eup %2574 }
 0x466   :  { %474 = vrot.lane.b32.xlu1 %v2575_v56, %s2717_s2 }
 0x4d8   :  { %v475_v47 = vpop.permute.xlu1 %474 }
 0x4d9   :  { %v477_v57 = vmul.f32 %v475_v47, %v460_v25 }
 0x4db   :  { %478 = vst.msk [vmem:[#allocation2 + $0x8] sm:$0xff] %vm338_vm4, %v477_v57  ;;  %v482_v43 = vpack.c.bf16 %v477_v57, %v477_v57 }
 0x4dc   :  { %479 = vst.msk [vmem:[#allocation2 + $0x30] sm:$0xff] %vm340_vm5, %v477_v57 }
 0x4dd   :  { %2350 = vmatmul.mubr.msk.bf16.vlgmr.msra.gmra.mxu0 %vm252_vm6, %v482_v43 }
 0x4de   :  { %819 = vmatpush1.bf16.msra.mxu0 %v2789_v5  ;;  %842 = vmatprep.mubr.bf16.mxu0 %v2716_v1 }
 0x4df   :  { %820 = vmatprep.subr.bf16.mxu0 %v2794_v6 }
 0x4e2   :  { %821 = vmatpush1.bf16.msra.mxu0 %v2803_v7 }
 0x4e3   :  { %822 = vmatprep.subr.bf16.mxu0 %v2809_v8 }
 0x4e6   :  { %823 = vmatpush1.bf16.msra.mxu0 %v2821_v10 }
 0x4e7   :  { %824 = vmatprep.subr.bf16.mxu0 %v2827_v11 }
 0x4ea   :  { %825 = vmatpush1.bf16.msra.mxu0 %v2837_v12 }
 0x4eb   :  { %1094 = vmatprep.subr.bf16.mxu0 %v2784_v4 }
 0x59d   :  { %v568_v36 = vpop.f32.mrf.mxu0 }
 0x59e   :  { %v575_v61 = vadd.f32 %v568_v36, %v480_v59 }
 0x59f   :  { %v570_v2 = vpop.f32.mrf.mxu0 }
 0x5a0   :  { %v576_v14 = vadd.f32 %v570_v2, %v481_v63  ;;  %v2351_v63 = vmul.f32 -1.442695, %v575_v61 }
 0x5a1   :  { %v572_v24 = vpop.f32.mrf.mxu0 }
 0x5a2   :  { %v578_v28 = vmul.f32 2.0, %v576_v14 }
 0x5a3   :  { %v573_v35 = vpop.f32.mrf.mxu0 }
 0x5a4   :  { %v580_v25 = vsel %vm37_vm3, %v576_v14, %v578_v28 }
 0x5a5   :  { %v2352_v9 = vmul.f32 -1.442695, %v580_v25 }
 0x5a7   :  { %2576 = vpow2.f32 %v2352_v9 }
 0x5b4   :  { %v2577_v18 = vpop.eup %2576 }
 0x5b5   :  { %v588_v38 = vadd.f32 1.0, %v2577_v18 }
 0x5b7   :  { %2578 = vrcp.f32 %v588_v38 }
 0x5b8   :  { %2580 = vpow2.f32 %v2351_v63 }
 0x5c4   :  { %v2579_v33 = vpop.eup %2578 }
 0x5c5   :  { %v594_v59 = vmul.f32 2.0, %v2579_v33  ;;  %v2581_v46 = vpop.eup %2580 }
 0x5c6   :  { %v587_v51 = vadd.f32 1.0, %v2581_v46 }
 0x5c7   :  { %v2354_v39 = vadd.f32 -1.0, %v594_v59 }
 0x5c8   :  { %2582 = vrcp.f32 %v587_v51 }
 0x5c9   :  { %v598_v42 = vsel %vm37_vm3, %v2579_v33, %v2354_v39 }
 0x5ca   :  { %601 = vrot.lane.b32.xlu0 %v598_v42, %s2717_s2 }
 0x5d5   :  { %v2583_v56 = vpop.eup %2582 }
 0x5d6   :  { %v599_v43 = vmul.f32 %v2583_v56, %v471_v52 }
 0x63c   :  { %v602_v47 = vpop.permute.xlu0 %601 }
 0x63d   :  { %v604_v57 = vmul.f32 %v2583_v56, %v602_v47 }
 0x63f   :  { %606 = vrot.lane.b32.xlu1 %v604_v57, %s2717_s2 }
 0x6b1   :  { %v607_v36 = vpop.permute.xlu1 %606 }
 0x6b2   :  { %v609_v2 = vadd.f32 %v607_v36, %v599_v43 }
 0x6b4   :  { %2584 = vtanh.f32 %v609_v2 }
 0x6c1   :  { %v2585_v14 = vpop.eup %2584 }
 0x6c2   :  { %612 = vrot.lane.b32.xlu0 %v2585_v14, %s2717_s2 }
 0x734   :  { %v613_v24 = vpop.permute.xlu0 %612 }
 0x735   :  { %v615_v28 = vmul.f32 %v613_v24, %v598_v42 }
 0x737   :  { %616 = vst.msk [vmem:[#allocation2 + $0x10] sm:$0xff] %vm338_vm4, %v615_v28  ;;  %v620_v61 = vpack.c.bf16 %v615_v28, %v615_v28 }
 0x738   :  { %617 = vst.msk [vmem:[#allocation2 + $0x28] sm:$0xff] %vm340_vm5, %v615_v28 }
 0x739   :  { %2363 = vmatmul.mubr.msk.bf16.vlgmr.msra.gmra.mxu1 %vm252_vm6, %v620_v61 }
 0x73a   :  { %957 = vmatpush1.bf16.msra.mxu1 %v2789_v5  ;;  %980 = vmatprep.mubr.bf16.mxu1 %v2716_v1 }
 0x73b   :  { %958 = vmatprep.subr.bf16.mxu1 %v2794_v6 }
 0x73e   :  { %959 = vmatpush1.bf16.msra.mxu1 %v2803_v7 }
 0x73f   :  { %960 = vmatprep.subr.bf16.mxu1 %v2809_v8 }
 0x742   :  { %961 = vmatpush1.bf16.msra.mxu1 %v2821_v10 }
 0x743   :  { %962 = vmatprep.subr.bf16.mxu1 %v2827_v11 }
 0x746   :  { %963 = vmatpush1.bf16.msra.mxu1 %v2837_v12 }
 0x747   :  { %1232 = vmatprep.subr.bf16.mxu1 %v2784_v4 }
 0x7f9   :  { %v706_v52 = vpop.f32.mrf.mxu1 }
 0x7fa   :  { %v713_v35 = vadd.f32 %v706_v52, %v618_v49 }
 0x7fb   :  { %v708_v25 = vpop.f32.mrf.mxu1 }
 0x7fc   :  { %v714_v9 = vadd.f32 %v708_v25, %v619_v54  ;;  %v2364_v54 = vmul.f32 -1.442695, %v713_v35 }
 0x7fd   :  { %v710_v18 = vpop.f32.mrf.mxu1 }
 0x7fe   :  { %v716_v38 = vmul.f32 2.0, %v714_v9 }
 0x7ff   :  { %v711_v33 = vpop.f32.mrf.mxu1 }
 0x800   :  { %v718_v4 = vsel %vm37_vm3, %v714_v9, %v716_v38 }
 0x801   :  { %v2365_v59 = vmul.f32 -1.442695, %v718_v4 }
 0x803   :  { %2586 = vpow2.f32 %v2365_v59 }
 0x810   :  { %v2587_v39 = vpop.eup %2586 }
 0x811   :  { %v726_v42 = vadd.f32 1.0, %v2587_v39 }
 0x813   :  { %2588 = vrcp.f32 %v726_v42 }
 0x814   :  { %2590 = vpow2.f32 %v2364_v54 }
 0x820   :  { %v2589_v63 = vpop.eup %2588 }
 0x821   :  { %v732_v49 = vmul.f32 2.0, %v2589_v63  ;;  %v2591_v56 = vpop.eup %2590 }
 0x822   :  { %v725_v47 = vadd.f32 1.0, %v2591_v56 }
 0x823   :  { %v2367_v46 = vadd.f32 -1.0, %v732_v49 }
 0x824   :  { %2592 = vrcp.f32 %v725_v47 }
 0x825   :  { %v736_v51 = vsel %vm37_vm3, %v2589_v63, %v2367_v46 }
 0x826   :  { %739 = vrot.lane.b32.xlu1 %v736_v51, %s2717_s2 }
 0x831   :  { %v2593_v57 = vpop.eup %2592 }
 0x832   :  { %v737_v14 = vmul.f32 %v2593_v57, %v609_v2 }
 0x898   :  { %v740_v43 = vpop.permute.xlu1 %739 }
 0x899   :  { %v742_v36 = vmul.f32 %v2593_v57, %v740_v43 }
 0x89b   :  { %744 = vrot.lane.b32.xlu0 %v742_v36, %s2717_s2 }
 0x90d   :  { %v745_v24 = vpop.permute.xlu0 %744 }
 0x90e   :  { %v747_v28 = vadd.f32 %v745_v24, %v737_v14 }
 0x910   :  { %2594 = vtanh.f32 %v747_v28 }
 0x91d   :  { %v2595_v61 = vpop.eup %2594 }
 0x91e   :  { %750 = vrot.lane.b32.xlu1 %v2595_v61, %s2717_s2 }
 0x990   :  { %v751_v52 = vpop.permute.xlu1 %750 }
 0x991   :  { %v753_v25 = vmul.f32 %v751_v52, %v736_v51 }
 0x993   :  { %754 = vst.msk [vmem:[#allocation2 + $0x18] sm:$0xff] %vm338_vm4, %v753_v25  ;;  %v758_v35 = vpack.c.bf16 %v753_v25, %v753_v25 }
 0x994   :  { %755 = vst.msk [vmem:[#allocation2 + $0x20] sm:$0xff] %vm340_vm5, %v753_v25 }
 0x995   :  { %2376 = vmatmul.mubr.msk.bf16.vlgmr.msra.gmra.mxu0 %vm252_vm6, %v758_v35 }
 0x996   :  { %1095 = vmatpush1.bf16.msra.mxu0 %v2789_v5  ;;  %1118 = vmatprep.mubr.bf16.mxu0 %v2716_v1 }
 0x997   :  { %1096 = vmatprep.subr.bf16.mxu0 %v2794_v6 }
 0x99a   :  { %1097 = vmatpush1.bf16.msra.mxu0 %v2803_v7 }
 0x99b   :  { %1098 = vmatprep.subr.bf16.mxu0 %v2809_v8 }
 0x99e   :  { %1099 = vmatpush1.bf16.msra.mxu0 %v2821_v10 }
 0x99f   :  { %1100 = vmatprep.subr.bf16.mxu0 %v2827_v11 }
 0x9a2   :  { %1101 = vmatpush1.bf16.msra.mxu0 %v2837_v12 }
 0xa55   :  { %v844_v2 = vpop.f32.mrf.mxu0 }
 0xa56   :  { %v851_v9 = vadd.f32 %v844_v2, %v756_v50 }
 0xa57   :  { %v846_v18 = vpop.f32.mrf.mxu0 }
 0xa58   :  { %v852_v38 = vadd.f32 %v846_v18, %v757_v55  ;;  %v2377_v40 = vmul.f32 -1.442695, %v851_v9 }
 0xa59   :  { %v848_v33 = vpop.f32.mrf.mxu0 }
 0xa5a   :  { %v854_v4 = vmul.f32 2.0, %v852_v38 }
 0xa5b   :  { %v849_v59 = vpop.f32.mrf.mxu0 }
 0xa5c   :  { %v856_v39 = vsel %vm37_vm3, %v852_v38, %v854_v4 }
 0xa5d   :  { %v2378_v42 = vmul.f32 -1.442695, %v856_v39 }
 0xa5f   :  { %2596 = vpow2.f32 %v2378_v42 }
 0xa6c   :  { %v2597_v63 = vpop.eup %2596 }
 0xa6d   :  { %v864_v49 = vadd.f32 1.0, %v2597_v63 }
 0xa6f   :  { %2598 = vrcp.f32 %v864_v49 }
 0xa70   :  { %2600 = vpow2.f32 %v2377_v40 }
 0xa7c   :  { %v2599_v37 = vpop.eup %2598 }
 0xa7d   :  { %v870_v44 = vmul.f32 2.0, %v2599_v37  ;;  %v2601_v48 = vpop.eup %2600 }
 0xa7e   :  { %v863_v55 = vadd.f32 1.0, %v2601_v48 }
 0xa7f   :  { %v2380_v50 = vadd.f32 -1.0, %v870_v44 }
 0xa80   :  { %2602 = vrcp.f32 %v863_v55 }
 0xa81   :  { %v874_v46 = vsel %vm37_vm3, %v2599_v37, %v2380_v50 }
 0xa82   :  { %877 = vrot.lane.b32.xlu0 %v874_v46, %s2717_s2 }
 0xa8d   :  { %v2603_v51 = vpop.eup %2602 }
 0xa8e   :  { %v875_v47 = vmul.f32 %v2603_v51, %v747_v28 }
 0xaf4   :  { %v878_v54 = vpop.permute.xlu0 %877 }
 0xaf5   :  { %v880_v56 = vmul.f32 %v2603_v51, %v878_v54 }
 0xaf7   :  { %882 = vrot.lane.b32.xlu1 %v880_v56, %s2717_s2 }
 0xb69   :  { %v883_v57 = vpop.permute.xlu1 %882 }
 0xb6a   :  { %v885_v43 = vadd.f32 %v883_v57, %v875_v47 }
 0xb6c   :  { %2604 = vtanh.f32 %v885_v43 }
 0xb79   :  { %v2605_v36 = vpop.eup %2604 }
 0xb7a   :  { %888 = vrot.lane.b32.xlu0 %v2605_v36, %s2717_s2 }
 0xbec   :  { %v889_v14 = vpop.permute.xlu0 %888 }
 0xbed   :  { %v891_v24 = vmul.f32 %v889_v14, %v874_v46 }
 0xbef   :  { %892 = vst.msk [vmem:[#allocation2 + $0x20] sm:$0xff] %vm338_vm4, %v891_v24  ;;  %v896_v61 = vpack.c.bf16 %v891_v24, %v891_v24 }
 0xbf0   :  { %893 = vst.msk [vmem:[#allocation2 + $0x18] sm:$0xff] %vm340_vm5, %v891_v24 }
 0xbf1   :  { %2389 = vmatmul.mubr.msk.bf16.vlgmr.msra.gmra.mxu1 %vm252_vm6, %v896_v61 }
 0xbf2   :  { %1233 = vmatpush1.bf16.msra.mxu1 %v2789_v5  ;;  %1256 = vmatprep.mubr.bf16.mxu1 %v2716_v1 }
 0xbf3   :  { %1234 = vmatprep.subr.bf16.mxu1 %v2794_v6 }
 0xbf6   :  { %1235 = vmatpush1.bf16.msra.mxu1 %v2803_v7 }
 0xbf7   :  { %1236 = vmatprep.subr.bf16.mxu1 %v2809_v8 }
 0xbfa   :  { %1237 = vmatpush1.bf16.msra.mxu1 %v2821_v10 }
 0xbfb   :  { %1238 = vmatprep.subr.bf16.mxu1 %v2827_v11 }
 0xbfe   :  { %1239 = vmatpush1.bf16.msra.mxu1 %v2837_v12 }
 0xcb1   :  { %v982_v28 = vpop.f32.mrf.mxu1 }
 0xcb2   :  { %v989_v5 = vadd.f32 %v982_v28, %v894_v60 }
 0xcb3   :  { %v984_v52 = vpop.f32.mrf.mxu1 }
 0xcb4   :  { %v990_v6 = vadd.f32 %v984_v52, %v895_v0  ;;  %v2390_v34 = vmul.f32 -1.442695, %v989_v5 }
 0xcb5   :  { %v986_v7 = vpop.f32.mrf.mxu1 }
 0xcb6   :  { %v992_v8 = vmul.f32 2.0, %v990_v6 }
 0xcb7   :  { %v987_v10 = vpop.f32.mrf.mxu1 }
 0xcb8   :  { %v994_v11 = vsel %vm37_vm3, %v990_v6, %v992_v8 }
 0xcb9   :  { %v2391_v12 = vmul.f32 -1.442695, %v994_v11 }
 0xcbb   :  { %2606 = vpow2.f32 %v2391_v12 }
 0xcc8   :  { %v2607_v25 = vpop.eup %2606 }
 0xcc9   :  { %v1002_v35 = vadd.f32 1.0, %v2607_v25 }
 0xccb   :  { %2608 = vrcp.f32 %v1002_v35 }
 0xccc   :  { %2610 = vpow2.f32 %v2390_v34 }
 0xcd8   :  { %v2609_v31 = vpop.eup %2608 }
 0xcd9   :  { %v1008_v53 = vmul.f32 2.0, %v2609_v31  ;;  %v2611_v58 = vpop.eup %2610 }
 0xcda   :  { %v1001_v0 = vadd.f32 1.0, %v2611_v58 }
 0xcdb   :  { %v2393_v60 = vadd.f32 -1.0, %v1008_v53 }
 0xcdc   :  { %2612 = vrcp.f32 %v1001_v0 }
 0xcdd   :  { %v1012_v2 = vsel %vm37_vm3, %v2609_v31, %v2393_v60 }
 0xcde   :  { %1015 = vrot.lane.b32.xlu1 %v1012_v2, %s2717_s2 }
 0xce9   :  { %v2613_v9 = vpop.eup %2612 }
 0xcea   :  { %v1013_v33 = vmul.f32 %v2613_v9, %v885_v43 }
 0xd50   :  { %v1016_v18 = vpop.permute.xlu1 %1015 }
 0xd51   :  { %v1018_v38 = vmul.f32 %v2613_v9, %v1016_v18 }
 0xd53   :  { %1020 = vrot.lane.b32.xlu0 %v1018_v38, %s2717_s2  ;;  %v2532_v38 = vld [vmem:[%s3585_s4 + $0x30] ss:$8 sps:$4 sm:$0xff]  }
 0xdc5   :  { %v1021_v4 = vpop.permute.xlu0 %1020 }
 0xdc6   :  { %v1023_v59 = vadd.f32 %v1021_v4, %v1013_v33  ;;  %v2534_v33 = vld [vmem:[%s3585_s4 + $0x34] ss:$8 sps:$4 sm:$0xff]  }
 0xdc7   :  { %1400 = vmatprep.subr.bf16.mxu0 %v2534_v33 }
 0xdc8   :  { %2614 = vtanh.f32 %v1023_v59 }
 0xdd5   :  { %v2615_v39 = vpop.eup %2614 }
 0xdd6   :  { %1026 = vrot.lane.b32.xlu1 %v2615_v39, %s2717_s2 }
 0xe48   :  { %v1027_v42 = vpop.permute.xlu1 %1026 }
 0xe49   :  { %v1029_v63 = vmul.f32 %v1027_v42, %v1012_v2  ;;  %v2537_v42 = vld [vmem:[%s3585_s4 + $0x24] ss:$8 sps:$4 sm:$0xff]  }
 0xe4b   :  { %1030 = vst.msk [vmem:[#allocation2 + $0x28] sm:$0xff] %vm338_vm4, %v1029_v63  ;;  %v1034_v49 = vpack.c.bf16 %v1029_v63, %v1029_v63 }
 0xe4c   :  { %1031 = vst.msk [vmem:[#allocation2 + $0x10] sm:$0xff] %vm340_vm5, %v1029_v63  ;;  %v2535_v63 = vld [vmem:[%s3585_s4 + $0x20] ss:$8 sps:$4 sm:$0xff]  }
 0xe4d   :  { %2402 = vmatmul.mubr.msk.bf16.vlgmr.msra.gmra.mxu0 %vm252_vm6, %v1034_v49  ;;  %v2538_v49 = vld [vmem:[%s3585_s4 + $0x10] ss:$8 sps:$4 sm:$0xff]  }
 0xe4e   :  { %1424 = vmatprep.mubr.bf16.mxu0 %v2716_v1  ;;  %1401 = vmatpush1.bf16.msra.mxu0 %v2532_v38 }
 0xe4f   :  { %1402 = vmatprep.subr.bf16.mxu0 %v2537_v42 }
 0xe52   :  { %1403 = vmatpush1.bf16.msra.mxu0 %v2535_v63 }
 0xf0d   :  { %v1120_v37 = vpop.f32.mrf.mxu0 }
 0xf0e   :  { %v1127_v44 = vadd.f32 %v1120_v37, %v1032_v13  ;;  %v2540_v37 = vld [vmem:[%s3585_s4 + $0x14] ss:$8 sps:$4 sm:$0xff]  }
 0xf0f   :  { %v1122_v50 = vpop.f32.mrf.mxu0  ;;  %1404 = vmatprep.subr.bf16.mxu0 %v2540_v37 }
 0xf10   :  { %v1128_v46 = vadd.f32 %v1122_v50, %v1033_v20  ;;  %v2403_v29 = vmul.f32 -1.442695, %v1127_v44  ;;  %v2543_v44 = vld [vmem:[%s3585_s4 + $0x4] ss:$8 sps:$4 sm:$0xff]   ;;  %1405 = vmatpush1.bf16.msra.mxu0 %v2538_v49  ;;  %v2541_v50 = vld [vmem:[%s3585_s4] ss:$8 sps:$4 sm:$0xff]  }
 0xf11   :  { %v1124_v40 = vpop.f32.mrf.mxu0  ;;  %1406 = vmatprep.subr.bf16.mxu0 %v2543_v44 }
 0xf12   :  { %v1130_v48 = vmul.f32 2.0, %v1128_v46  ;;  %v3202_v40 = vld [vmem:[%s3586_s6 + $0x34] ss:$8 sps:$4 sm:$0xff]  }
 0xf13   :  { %v1125_v55 = vpop.f32.mrf.mxu0  ;;  %1523 = vmatprep.subr.bf16.mxu1 %v3202_v40 }
 0xf14   :  { %v1132_v51 = vsel %vm37_vm3, %v1128_v46, %v1130_v48  ;;  %1407 = vmatpush1.bf16.msra.mxu0 %v2541_v50  ;;  %v3207_v48 = vld [vmem:[%s3586_s6 + $0x30] ss:$8 sps:$4 sm:$0xff]   ;;  %v3213_v55 = vld [vmem:[%s3586_s6 + $0x24] ss:$8 sps:$4 sm:$0xff]  }
 0xf15   :  { %v2404_v54 = vmul.f32 -1.442695, %v1132_v51  ;;  %v3218_v51 = vld [vmem:[%s3586_s6 + $0x20] ss:$8 sps:$4 sm:$0xff]   ;;  %1699 = vmatprep.subr.bf16.mxu0 %v3202_v40 }
 0xf17   :  { %2616 = vpow2.f32 %v2404_v54  ;;  %v3227_v54 = vld [vmem:[%s3586_s6 + $0x14] ss:$8 sps:$4 sm:$0xff]  }
 0xf24   :  { %v2617_v56 = vpop.eup %2616 }
 0xf25   :  { %v1140_v47 = vadd.f32 1.0, %v2617_v56  ;;  %v3232_v56 = vld [vmem:[%s3586_s6 + $0x10] ss:$8 sps:$4 sm:$0xff]  }
 0xf27   :  { %2618 = vrcp.f32 %v1140_v47  ;;  %v3237_v47 = vld [vmem:[%s3586_s6 + $0x4] ss:$8 sps:$4 sm:$0xff]  }
 0xf28   :  { %2620 = vpow2.f32 %v2403_v29 }
 0xf34   :  { %v2619_v26 = vpop.eup %2618 }
 0xf35   :  { %v1146_v62 = vmul.f32 2.0, %v2619_v26  ;;  %v2621_v3 = vpop.eup %2620 }
 0xf36   :  { %v1139_v20 = vadd.f32 1.0, %v2621_v3 }
 0xf37   :  { %v2406_v13 = vadd.f32 -1.0, %v1146_v62 }
 0xf38   :  { %2622 = vrcp.f32 %v1139_v20  ;;  %v1310_v20 = vld [vmem:[#allocation2 + $0x10] sm:$0xff] }
 0xf39   :  { %v1150_v57 = vsel %vm37_vm3, %v2619_v26, %v2406_v13  ;;  %v3244_v26 = vld [vmem:[%s3586_s6] ss:$8 sps:$4 sm:$0xff]  }
 0xf3a   :  { %1153 = vrot.lane.b32.xlu0 %v1150_v57, %s2717_s2 }
 0xf45   :  { %v2623_v43 = vpop.eup %2622 }
 0xf46   :  { %v1151_v24 = vmul.f32 %v2623_v43, %v1023_v59 }
 0xfac   :  { %v1154_v36 = vpop.permute.xlu0 %1153 }
 0xfad   :  { %v1156_v14 = vmul.f32 %v2623_v43, %v1154_v36  ;;  %v1311_v43 = vld [vmem:[#allocation2 + $0x18] sm:$0xff] }
 0xfae   :  { %v1317_v36 = vpack.c.bf16 %v1311_v43, %v1310_v20 }
 0xfaf   :  { %1158 = vrot.lane.b32.xlu1 %v1156_v14, %s2717_s2  ;;  %v1313_v14 = vld [vmem:[#allocation2 + $0x28] sm:$0xff] }
0x1021   :  { %v1159_v61 = vpop.permute.xlu1 %1158 }
0x1022   :  { %v1161_v28 = vadd.f32 %v1159_v61, %v1151_v24  ;;  %v1312_v24 = vld [vmem:[#allocation2 + $0x20] sm:$0xff] }
0x1023   :  { %v1318_v61 = vpack.c.bf16 %v1313_v14, %v1312_v24 }
0x1024   :  { %2624 = vtanh.f32 %v1161_v28 }
0x1031   :  { %v2625_v5 = vpop.eup %2624 }
0x1032   :  { %1164 = vrot.lane.b32.xlu0 %v2625_v5, %s2717_s2 }
0x10a4   :  { %v1165_v52 = vpop.permute.xlu0 %1164 }
0x10a5   :  { %v1167_v6 = vmul.f32 %v1165_v52, %v1150_v57 }
0x10a7   :  { %1168 = vst.msk [vmem:[#allocation2 + $0x30] sm:$0xff] %vm338_vm4, %v1167_v6  ;;  %v1172_v7 = vpack.c.bf16 %v1167_v6, %v1167_v6 }
0x10a8   :  { %1169 = vst.msk [vmem:[#allocation2 + $0x8] sm:$0xff] %vm340_vm5, %v1167_v6 }
0x10a9   :  { %2415 = vmatmul.mubr.msk.bf16.vlgmr.msra.gmra.mxu1 %vm252_vm6, %v1172_v7 }
0x10aa   :  { %1547 = vmatprep.mubr.bf16.mxu1 %v2716_v1  ;;  %1524 = vmatpush1.bf16.msra.mxu1 %v3207_v48 }
0x10ab   :  { %1525 = vmatprep.subr.bf16.mxu1 %v3213_v55 }
0x10ae   :  { %1526 = vmatpush1.bf16.msra.mxu1 %v3218_v51  ;;  %v1314_v5 = vld [vmem:[#allocation2 + $0x30] sm:$0xff] }
0x10af   :  { %1527 = vmatprep.subr.bf16.mxu1 %v3227_v54  ;;  %v1309_v29 = vld [vmem:[#allocation2 + $0x8] sm:$0xff] }
0x10b2   :  { %1528 = vmatpush1.bf16.msra.mxu1 %v3232_v56 }
0x10b3   :  { %1529 = vmatprep.subr.bf16.mxu1 %v3237_v47 }
0x10b6   :  { %1530 = vmatpush1.bf16.msra.mxu1 %v3244_v26 }
0x10b7   :  { %1611 = vmatprep.subr.bf16.mxu1 %v3202_v40 }
0x10b9   :  { %1548 = vmatmul.mubr.bf16.vlgmr.msra.gmra.mxu1 %v2716_v1 }
0x10ba   :  { %1612 = vmatpush1.bf16.msra.mxu1 %v3207_v48  ;;  %1635 = vmatprep.mubr.bf16.mxu1 %v2716_v1 }
0x10bb   :  { %1613 = vmatprep.subr.bf16.mxu1 %v3213_v55 }
0x10be   :  { %1614 = vmatpush1.bf16.msra.mxu1 %v3218_v51 }
0x10bf   :  { %1615 = vmatprep.subr.bf16.mxu1 %v3227_v54 }
0x10c2   :  { %1616 = vmatpush1.bf16.msra.mxu1 %v3232_v56 }
0x10c3   :  { %1617 = vmatprep.subr.bf16.mxu1 %v3237_v47 }
0x10c6   :  { %1618 = vmatpush1.bf16.msra.mxu1 %v3244_v26 }
0x10c7   :  { %1787 = vmatprep.subr.bf16.mxu1 %v3202_v40 }
0x1169   :  { %v1258_v8 = vpop.f32.mrf.mxu1 }
0x116a   :  { %v1265_v10 = vadd.f32 %v1258_v8, %v1170_v30 }
0x116b   :  { %v1260_v11 = vpop.f32.mrf.mxu1 }
0x116c   :  { %v1266_v12 = vadd.f32 %v1260_v11, %v1171_v23  ;;  %v2416_v27 = vmul.f32 -1.442695, %v1265_v10  ;;  %v1328_v11 = vld [vmem:[%s3587_s5] sm:$0x3] }
0x116d   :  { %v1262_v25 = vpop.f32.mrf.mxu1 }
0x116e   :  { %v1268_v35 = vmul.f32 2.0, %v1266_v12 }
0x116f   :  { %v1263_v31 = vpop.f32.mrf.mxu1 }
0x1170   :  { %v1270_v53 = vsel %vm37_vm3, %v1266_v12, %v1268_v35  ;;  %v1333_v35 = vrot.slane %v1328_v11, %v78_v17 }
0x1171   :  { %v2417_v60 = vmul.f32 -1.442695, %v1270_v53  ;;  %v1337_v53 = vrot.slane %v1328_v11, %v82_v22 }
0x1173   :  { %2626 = vpow2.f32 %v2417_v60 }
0x1179   :  { %v3278_v6 = vpop.f32.mrf.mxu1 }
0x117b   :  { %v1551_v7 = vpop.f32.mrf.mxu1 }
0x117d   :  { %v1553_v8 = vpop.f32.mrf.mxu1 }
0x117f   :  { %v1554_v10 = vpop.f32.mrf.mxu1 }
0x1180   :  { %v2627_v2 = vpop.eup %2626 }
0x1181   :  { %v1278_v34 = vadd.f32 1.0, %v2627_v2 }
0x1183   :  { %2628 = vrcp.f32 %v1278_v34 }
0x1184   :  { %2630 = vpow2.f32 %v2416_v27 }
0x1190   :  { %v2629_v21 = vpop.eup %2628 }
0x1191   :  { %v1284_v15 = vmul.f32 2.0, %v2629_v21  ;;  %v2631_v19 = vpop.eup %2630 }
0x1192   :  { %v1277_v23 = vadd.f32 1.0, %v2631_v19 }
0x1193   :  { %v2419_v30 = vadd.f32 -1.0, %v1284_v15 }
0x1194   :  { %2632 = vrcp.f32 %v1277_v23 }
0x1195   :  { %v3169_v58 = vsel %vm37_vm3, %v2629_v21, %v2419_v30 }
0x1196   :  { %1291 = vrot.lane.b32.xlu1 %v3169_v58, %s2717_s2 }
0x11a1   :  { %v2633_v0 = vpop.eup %2632 }
0x11a2   :  { %v1289_v4 = vmul.f32 %v2633_v0, %v1161_v28 }
0x1208   :  { %v1292_v9 = vpop.permute.xlu1 %1291 }
0x1209   :  { %v1294_v18 = vmul.f32 %v2633_v0, %v1292_v9 }
0x120b   :  { %1296 = vrot.lane.b32.xlu0 %v1294_v18, %s2717_s2 }
0x127d   :  { %v1297_v59 = vpop.permute.xlu0 %1296 }
0x127e   :  { %v1299_v39 = vadd.f32 %v1297_v59, %v1289_v4 }
0x1280   :  { %2634 = vtanh.f32 %v1299_v39 }
0x128d   :  { %v2635_v46 = vpop.eup %2634 }
0x128e   :  { %1302 = vrot.lane.b32.xlu1 %v2635_v46, %s2717_s2 }
0x1300   :  { %v1303_v62 = vpop.permute.xlu1 %1302 }
0x1301   :  { %v1305_v13 = vmul.f32 %v1303_v62, %v3169_v58 }
0x1303   :  { %1306 = vst.msk [vmem:[#allocation2 + $0x38] sm:$0xff] %vm338_vm4, %v1305_v13 }
0x1304   :  { %1307 = vst.msk [vmem:[#allocation2] sm:$0xff] %vm340_vm5, %v1305_v13 }
0x130a   :  { %v1315_v28 = vld [vmem:[#allocation2 + $0x38] sm:$0xff] }
0x130b   :  { %v1308_v57 = vld [vmem:[#allocation2] sm:$0xff]  ;;  %v1319_v52 = vpack.c.bf16 %v1315_v28, %v1314_v5 }
0x130c   :  { %v1316_v3 = vpack.c.bf16 %v1309_v29, %v1308_v57 }
0x130e   :  { %2428 = vmatmul.mubr.msk.bf16.vlgmr.msra.gmra.mxu0 %vm252_vm6, %v1316_v3 }
0x130f   :  { %1434 = vmatprep.mubr.bf16.mxu0 %v2716_v1  ;;  %1700 = vmatpush1.bf16.msra.mxu0 %v3207_v48 }
0x1310   :  { %1701 = vmatprep.subr.bf16.mxu0 %v3213_v55 }
0x1313   :  { %1702 = vmatpush1.bf16.msra.mxu0 %v3218_v51 }
0x1314   :  { %1703 = vmatprep.subr.bf16.mxu0 %v3227_v54 }
0x1316   :  { %2429 = vmatmul.mubr.msk.bf16.gmra.mxu0 %vm252_vm6, %v1317_v36 }
0x1317   :  { %1444 = vmatprep.mubr.bf16.mxu0 %v2716_v1  ;;  %1704 = vmatpush1.bf16.msra.mxu0 %v3232_v56 }
0x1318   :  { %1705 = vmatprep.subr.bf16.mxu0 %v3237_v47 }
0x131b   :  { %1706 = vmatpush1.bf16.msra.mxu0 %v3244_v26 }
0x131c   :  { %1875 = vmatprep.subr.bf16.mxu0 %v3202_v40 }
0x131e   :  { %2430 = vmatmul.mubr.msk.bf16.gmra.mxu0 %vm252_vm6, %v1318_v61 }
0x131f   :  { %1454 = vmatprep.mubr.bf16.mxu0 %v2716_v1 }
0x1326   :  { %2431 = vmatmul.mubr.msk.bf16.gmra.mxu0 %vm252_vm6, %v1319_v52 }
0x1327   :  { %1723 = vmatprep.mubr.bf16.mxu0 %v2716_v1 }
0x13ce   :  { %v1426_v12 = vpop.f32.mrf.mxu0 }
0x13cf   :  { %v3351_v43 = vadd.f32 %v1426_v12, %v1333_v35 }
0x13d0   :  { %v1428_v25 = vpop.f32.mrf.mxu0 }
0x13d1   :  { %v3363_v28 = vadd.f32 %v1428_v25, %v1337_v53 }
0x13d2   :  { %v1430_v31 = vpop.f32.mrf.mxu0 }
0x13d3   :  { %v3287_v60 = vadd.f32 %v1430_v31, %v1333_v35 }
0x13d4   :  { %v1432_v2 = vpop.f32.mrf.mxu0 }
0x13d5   :  { %v3289_v34 = vadd.f32 %v1432_v2, %v1337_v53 }
0x13d6   :  { %v1436_v21 = vpop.f32.mrf.mxu0 }
0x13d7   :  { %v3291_v15 = vadd.f32 %v1436_v21, %v1333_v35 }
0x13d8   :  { %v1438_v30 = vpop.f32.mrf.mxu0 }
0x13d9   :  { %v3293_v58 = vadd.f32 %v1438_v30, %v1337_v53 }
0x13da   :  { %v1440_v27 = vpop.f32.mrf.mxu0 }
0x13db   :  { %v3295_v19 = vadd.f32 %v1440_v27, %v1333_v35 }
0x13dc   :  { %v1442_v23 = vpop.f32.mrf.mxu0 }
0x13dd   :  { %v3297_v17 = vadd.f32 %v1442_v23, %v1337_v53 }
0x13de   :  { %v1446_v0 = vpop.f32.mrf.mxu0 }
0x13df   :  { %v3299_v16 = vadd.f32 %v1446_v0, %v1333_v35 }
0x13e0   :  { %v1448_v22 = vpop.f32.mrf.mxu0 }
0x13e1   :  { %v3301_v9 = vadd.f32 %v1448_v22, %v1337_v53  ;;  %v1773_v18 = vsel %vm2894_vm1, %v3295_v19, %v3299_v16  ;;  %v1861_v38 = vsel %vm2894_vm1, %v3299_v16, %v3295_v19 }
0x13e2   :  { %v1450_v33 = vpop.f32.mrf.mxu0 }
0x13e3   :  { %v3311_v4 = vadd.f32 %v1450_v33, %v1333_v35  ;;  %v1774_v59 = vsel %vm2900_vm2, %v3297_v17, %v3301_v9  ;;  %v1862_v39 = vsel %vm2900_vm2, %v3301_v9, %v3297_v17 }
0x13e4   :  { %v1452_v42 = vpop.f32.mrf.mxu0 }
0x13e5   :  { %v3321_v63 = vadd.f32 %v1452_v42, %v1337_v53  ;;  %v1685_v49 = vsel %vm2894_vm1, %v3291_v15, %v3311_v4  ;;  %v1949_v37 = vsel %vm2894_vm1, %v3311_v4, %v3291_v15 }
0x13e6   :  { %v1456_v44 = vpop.f32.mrf.mxu0 }
0x13e7   :  { %v3331_v50 = vadd.f32 %v1456_v44, %v1333_v35  ;;  %v1686_v46 = vsel %vm2900_vm2, %v3293_v58, %v3321_v63  ;;  %v1950_v62 = vsel %vm2900_vm2, %v3321_v63, %v3293_v58 }
0x13e8   :  { %v1458_v13 = vpop.f32.mrf.mxu0 }
0x13e9   :  { %v3341_v57 = vadd.f32 %v1458_v13, %v1337_v53  ;;  %v1597_v29 = vsel %vm2894_vm1, %v3287_v60, %v3331_v50  ;;  %v2037_v3 = vsel %vm2894_vm1, %v3331_v50, %v3287_v60 }
0x13ea   :  { %v1460_v20 = vpop.f32.mrf.mxu0 }
0x13eb   :  { %v3353_v36 = vadd.f32 %v1460_v20, %v1333_v35  ;;  %v1598_v14 = vsel %vm2900_vm2, %v3289_v34, %v3341_v57  ;;  %v2038_v24 = vsel %vm2900_vm2, %v3341_v57, %v3289_v34 }
0x13ec   :  { %v1462_v61 = vpop.f32.mrf.mxu0 }
0x13ed   :  { %v1465_v5 = vsel %vm2894_vm1, %v3351_v43, %v3353_v36  ;;  %v3369_v52 = vadd.f32 %v1462_v61, %v1337_v53  ;;  %v2125_v8 = vsel %vm2894_vm1, %v3353_v36, %v3351_v43 }
0x13ee   :  { %v1556_v0 = vadd.f32 %v3278_v6, %v1465_v5 }
0x13ef   :  { %v1466_v10 = vsel %vm2900_vm2, %v3363_v28, %v3369_v52  ;;  %v2126_v11 = vsel %vm2900_vm2, %v3369_v52, %v3363_v28 }
0x13f0   :  { %v1557_v12 = vadd.f32 %v1551_v7, %v1466_v10  ;;  %v2440_v7 = vmul.f32 -1.442695, %v1556_v0 }
0x13f2   :  { %v1559_v25 = vmul.f32 2.0, %v1557_v12 }
0x13f4   :  { %v1561_v35 = vsel %vm37_vm3, %v1557_v12, %v1559_v25 }
0x13f5   :  { %v2441_v31 = vmul.f32 -1.442695, %v1561_v35 }
0x13f7   :  { %2636 = vpow2.f32 %v2441_v31 }
0x1404   :  { %v2637_v53 = vpop.eup %2636 }
0x1405   :  { %v1569_v2 = vadd.f32 1.0, %v2637_v53 }
0x1407   :  { %2638 = vrcp.f32 %v1569_v2 }
0x1408   :  { %2640 = vpow2.f32 %v2440_v7 }
0x1414   :  { %v2639_v21 = vpop.eup %2638 }
0x1415   :  { %v1575_v30 = vmul.f32 2.0, %v2639_v21  ;;  %v2641_v22 = vpop.eup %2640 }
0x1416   :  { %v1568_v33 = vadd.f32 1.0, %v2641_v22 }
0x1417   :  { %v2443_v27 = vadd.f32 -1.0, %v1575_v30 }
0x1418   :  { %2642 = vrcp.f32 %v1568_v33 }
0x1419   :  { %v1579_v23 = vsel %vm37_vm3, %v2639_v21, %v2443_v27 }
0x141a   :  { %1582 = vrot.lane.b32.xlu0 %v1579_v23, %s2717_s2 }
0x1425   :  { %v2643_v42 = vpop.eup %2642 }
0x1426   :  { %v1580_v20 = vmul.f32 0.0, %v2643_v42 }
0x148c   :  { %v1583_v44 = vpop.permute.xlu0 %1582 }
0x148d   :  { %v1585_v13 = vmul.f32 %v2643_v42, %v1583_v44 }
0x148f   :  { %1587 = vrot.lane.b32.xlu1 %v1585_v13, %s2717_s2 }
0x1501   :  { %v1588_v61 = vpop.permute.xlu1 %1587 }
0x1502   :  { %v1590_v10 = vadd.f32 %v1588_v61, %v1580_v20 }
0x1504   :  { %2644 = vtanh.f32 %v1590_v10 }
0x1511   :  { %v2645_v12 = vpop.eup %2644 }
0x1512   :  { %1593 = vrot.lane.b32.xlu0 %v2645_v12, %s2717_s2 }
0x1584   :  { %v1594_v25 = vpop.permute.xlu0 %1593 }
0x1585   :  { %v1596_v35 = vmul.f32 %v1594_v25, %v1579_v23 }
0x1587   :  { %v1599_v6 = vpack.c.bf16 %v1596_v35, %v1596_v35 }
0x1589   :  { %2444 = vmatmul.mubr.msk.bf16.vlgmr.msra.gmra.mxu1 %vm252_vm6, %v1599_v6 }
0x158a   :  { %1788 = vmatpush1.bf16.msra.mxu1 %v3207_v48  ;;  %1811 = vmatprep.mubr.bf16.mxu1 %v2716_v1 }
0x158b   :  { %1789 = vmatprep.subr.bf16.mxu1 %v3213_v55 }
0x158e   :  { %1790 = vmatpush1.bf16.msra.mxu1 %v3218_v51 }
0x158f   :  { %1791 = vmatprep.subr.bf16.mxu1 %v3227_v54 }
0x1592   :  { %1792 = vmatpush1.bf16.msra.mxu1 %v3232_v56 }
0x1593   :  { %1793 = vmatprep.subr.bf16.mxu1 %v3237_v47 }
0x1596   :  { %1794 = vmatpush1.bf16.msra.mxu1 %v3244_v26 }
0x1597   :  { %1963 = vmatprep.subr.bf16.mxu1 %v3202_v40 }
0x1649   :  { %v1637_v5 = vpop.f32.mrf.mxu1 }
0x164a   :  { %v1644_v31 = vadd.f32 %v1637_v5, %v1597_v29 }
0x164b   :  { %v1639_v53 = vpop.f32.mrf.mxu1 }
0x164c   :  { %v1645_v2 = vadd.f32 %v1639_v53, %v1598_v14  ;;  %v2445_v29 = vmul.f32 -1.442695, %v1644_v31 }
0x164d   :  { %v1641_v21 = vpop.f32.mrf.mxu1 }
0x164e   :  { %v1647_v30 = vmul.f32 2.0, %v1645_v2 }
0x164f   :  { %v1642_v27 = vpop.f32.mrf.mxu1 }
0x1650   :  { %v1649_v23 = vsel %vm37_vm3, %v1645_v2, %v1647_v30 }
0x1651   :  { %v2446_v0 = vmul.f32 -1.442695, %v1649_v23 }
0x1653   :  { %2646 = vpow2.f32 %v2446_v0 }
0x1660   :  { %v2647_v7 = vpop.eup %2646 }
0x1661   :  { %v1657_v22 = vadd.f32 1.0, %v2647_v7 }
0x1663   :  { %2648 = vrcp.f32 %v1657_v22 }
0x1664   :  { %2650 = vpow2.f32 %v2445_v29 }
0x1670   :  { %v2649_v33 = vpop.eup %2648 }
0x1671   :  { %v1663_v42 = vmul.f32 2.0, %v2649_v33  ;;  %v2651_v14 = vpop.eup %2650 }
0x1672   :  { %v1656_v20 = vadd.f32 1.0, %v2651_v14 }
0x1673   :  { %v2448_v44 = vadd.f32 -1.0, %v1663_v42 }
0x1674   :  { %2652 = vrcp.f32 %v1656_v20 }
0x1675   :  { %v1667_v13 = vsel %vm37_vm3, %v2649_v33, %v2448_v44 }
0x1676   :  { %1670 = vrot.lane.b32.xlu1 %v1667_v13, %s2717_s2 }
0x1681   :  { %v2653_v61 = vpop.eup %2652 }
0x1682   :  { %v1668_v35 = vmul.f32 %v2653_v61, %v1590_v10 }
0x16e8   :  { %v1671_v12 = vpop.permute.xlu1 %1670 }
0x16e9   :  { %v1673_v25 = vmul.f32 %v2653_v61, %v1671_v12 }
0x16eb   :  { %1675 = vrot.lane.b32.xlu0 %v1673_v25, %s2717_s2 }
0x175d   :  { %v1676_v6 = vpop.permute.xlu0 %1675 }
0x175e   :  { %v1678_v5 = vadd.f32 %v1676_v6, %v1668_v35 }
0x1760   :  { %2654 = vtanh.f32 %v1678_v5 }
0x176d   :  { %v2655_v53 = vpop.eup %2654 }
0x176e   :  { %1681 = vrot.lane.b32.xlu1 %v2655_v53, %s2717_s2 }
0x17e0   :  { %v1682_v2 = vpop.permute.xlu1 %1681 }
0x17e1   :  { %v1684_v21 = vmul.f32 %v1682_v2, %v1667_v13 }
0x17e3   :  { %v1687_v30 = vpack.c.bf16 %v1684_v21, %v1684_v21 }
0x17e5   :  { %2449 = vmatmul.mubr.msk.bf16.vlgmr.msra.gmra.mxu0 %vm252_vm6, %v1687_v30 }
0x17e6   :  { %1876 = vmatpush1.bf16.msra.mxu0 %v3207_v48  ;;  %1899 = vmatprep.mubr.bf16.mxu0 %v2716_v1 }
0x17e7   :  { %1877 = vmatprep.subr.bf16.mxu0 %v3213_v55 }
0x17ea   :  { %1878 = vmatpush1.bf16.msra.mxu0 %v3218_v51 }
0x17eb   :  { %1879 = vmatprep.subr.bf16.mxu0 %v3227_v54 }
0x17ee   :  { %1880 = vmatpush1.bf16.msra.mxu0 %v3232_v56 }
0x17ef   :  { %1881 = vmatprep.subr.bf16.mxu0 %v3237_v47 }
0x17f2   :  { %1882 = vmatpush1.bf16.msra.mxu0 %v3244_v26 }
0x17f3   :  { %2051 = vmatprep.subr.bf16.mxu0 %v3202_v40 }
0x18a5   :  { %v1725_v10 = vpop.f32.mrf.mxu0 }
0x18a6   :  { %v1732_v31 = vadd.f32 %v1725_v10, %v1685_v49 }
0x18a7   :  { %v1727_v27 = vpop.f32.mrf.mxu0 }
0x18a8   :  { %v1733_v23 = vadd.f32 %v1727_v27, %v1686_v46  ;;  %v2450_v46 = vmul.f32 -1.442695, %v1732_v31 }
0x18a9   :  { %v1729_v0 = vpop.f32.mrf.mxu0 }
0x18aa   :  { %v1735_v7 = vmul.f32 2.0, %v1733_v23 }
0x18ab   :  { %v1730_v22 = vpop.f32.mrf.mxu0 }
0x18ac   :  { %v1737_v33 = vsel %vm37_vm3, %v1733_v23, %v1735_v7 }
0x18ad   :  { %v2451_v42 = vmul.f32 -1.442695, %v1737_v33 }
0x18af   :  { %2656 = vpow2.f32 %v2451_v42 }
0x18bc   :  { %v2657_v44 = vpop.eup %2656 }
0x18bd   :  { %v1745_v13 = vadd.f32 1.0, %v2657_v44 }
0x18bf   :  { %2658 = vrcp.f32 %v1745_v13 }
0x18c0   :  { %2660 = vpow2.f32 %v2450_v46 }
0x18cc   :  { %v2659_v29 = vpop.eup %2658 }
0x18cd   :  { %v1751_v49 = vmul.f32 2.0, %v2659_v29  ;;  %v2661_v61 = vpop.eup %2660 }
0x18ce   :  { %v1744_v12 = vadd.f32 1.0, %v2661_v61 }
0x18cf   :  { %v2453_v14 = vadd.f32 -1.0, %v1751_v49 }
0x18d0   :  { %2662 = vrcp.f32 %v1744_v12 }
0x18d1   :  { %v1755_v20 = vsel %vm37_vm3, %v2659_v29, %v2453_v14 }
0x18d2   :  { %1758 = vrot.lane.b32.xlu0 %v1755_v20, %s2717_s2 }
0x18dd   :  { %v2663_v25 = vpop.eup %2662 }
0x18de   :  { %v1756_v53 = vmul.f32 %v2663_v25, %v1678_v5 }
0x1944   :  { %v1759_v35 = vpop.permute.xlu0 %1758 }
0x1945   :  { %v1761_v6 = vmul.f32 %v2663_v25, %v1759_v35 }
0x1947   :  { %1763 = vrot.lane.b32.xlu1 %v1761_v6, %s2717_s2 }
0x19b9   :  { %v1764_v2 = vpop.permute.xlu1 %1763 }
0x19ba   :  { %v1766_v21 = vadd.f32 %v1764_v2, %v1756_v53 }
0x19bc   :  { %2664 = vtanh.f32 %v1766_v21 }
0x19c9   :  { %v2665_v30 = vpop.eup %2664 }
0x19ca   :  { %1769 = vrot.lane.b32.xlu0 %v2665_v30, %s2717_s2 }
0x1a3c   :  { %v1770_v10 = vpop.permute.xlu0 %1769 }
0x1a3d   :  { %v1772_v27 = vmul.f32 %v1770_v10, %v1755_v20 }
0x1a3f   :  { %v1775_v23 = vpack.c.bf16 %v1772_v27, %v1772_v27 }
0x1a41   :  { %2454 = vmatmul.mubr.msk.bf16.vlgmr.msra.gmra.mxu1 %vm252_vm6, %v1775_v23 }
0x1a42   :  { %1964 = vmatpush1.bf16.msra.mxu1 %v3207_v48  ;;  %1987 = vmatprep.mubr.bf16.mxu1 %v2716_v1 }
0x1a43   :  { %1965 = vmatprep.subr.bf16.mxu1 %v3213_v55 }
0x1a46   :  { %1966 = vmatpush1.bf16.msra.mxu1 %v3218_v51 }
0x1a47   :  { %1967 = vmatprep.subr.bf16.mxu1 %v3227_v54 }
0x1a4a   :  { %1968 = vmatpush1.bf16.msra.mxu1 %v3232_v56 }
0x1a4b   :  { %1969 = vmatprep.subr.bf16.mxu1 %v3237_v47 }
0x1a4e   :  { %1970 = vmatpush1.bf16.msra.mxu1 %v3244_v26 }
0x1a4f   :  { %2139 = vmatprep.subr.bf16.mxu1 %v3202_v40 }
0x1b01   :  { %v1813_v5 = vpop.f32.mrf.mxu1 }
0x1b02   :  { %v1820_v31 = vadd.f32 %v1813_v5, %v1773_v18 }
0x1b03   :  { %v1815_v0 = vpop.f32.mrf.mxu1 }
0x1b04   :  { %v1821_v7 = vadd.f32 %v1815_v0, %v1774_v59  ;;  %v2455_v59 = vmul.f32 -1.442695, %v1820_v31 }
0x1b05   :  { %v1817_v22 = vpop.f32.mrf.mxu1 }
0x1b06   :  { %v1823_v33 = vmul.f32 2.0, %v1821_v7 }
0x1b07   :  { %v1818_v42 = vpop.f32.mrf.mxu1 }
0x1b08   :  { %v1825_v40 = vsel %vm37_vm3, %v1821_v7, %v1823_v33 }
0x1b09   :  { %v2456_v44 = vmul.f32 -1.442695, %v1825_v40 }
0x1b0b   :  { %2666 = vpow2.f32 %v2456_v44 }
0x1b18   :  { %v2667_v13 = vpop.eup %2666 }
0x1b19   :  { %v1833_v29 = vadd.f32 1.0, %v2667_v13 }
0x1b1b   :  { %2668 = vrcp.f32 %v1833_v29 }
0x1b1c   :  { %2670 = vpow2.f32 %v2455_v59 }
0x1b28   :  { %v2669_v49 = vpop.eup %2668 }
0x1b29   :  { %v1839_v18 = vmul.f32 2.0, %v2669_v49  ;;  %v2671_v46 = vpop.eup %2670 }
0x1b2a   :  { %v1832_v61 = vadd.f32 1.0, %v2671_v46 }
0x1b2b   :  { %v2458_v14 = vadd.f32 -1.0, %v1839_v18 }
0x1b2c   :  { %2672 = vrcp.f32 %v1832_v61 }
0x1b2d   :  { %v1843_v20 = vsel %vm37_vm3, %v2669_v49, %v2458_v14 }
0x1b2e   :  { %1846 = vrot.lane.b32.xlu1 %v1843_v20, %s2717_s2 }
0x1b39   :  { %v2673_v12 = vpop.eup %2672 }
0x1b3a   :  { %v1844_v6 = vmul.f32 %v2673_v12, %v1766_v21 }
0x1ba0   :  { %v1847_v25 = vpop.permute.xlu1 %1846 }
0x1ba1   :  { %v1849_v35 = vmul.f32 %v2673_v12, %v1847_v25 }
0x1ba3   :  { %1851 = vrot.lane.b32.xlu0 %v1849_v35, %s2717_s2 }
0x1c15   :  { %v1852_v53 = vpop.permute.xlu0 %1851 }
0x1c16   :  { %v1854_v2 = vadd.f32 %v1852_v53, %v1844_v6 }
0x1c18   :  { %2674 = vtanh.f32 %v1854_v2 }
0x1c25   :  { %v2675_v30 = vpop.eup %2674 }
0x1c26   :  { %1857 = vrot.lane.b32.xlu1 %v2675_v30, %s2717_s2 }
0x1c98   :  { %v1858_v10 = vpop.permute.xlu1 %1857 }
0x1c99   :  { %v1860_v27 = vmul.f32 %v1858_v10, %v1843_v20 }
0x1c9b   :  { %v1863_v23 = vpack.c.bf16 %v1860_v27, %v1860_v27 }
0x1c9d   :  { %2459 = vmatmul.mubr.msk.bf16.vlgmr.msra.gmra.mxu0 %vm252_vm6, %v1863_v23 }
0x1c9e   :  { %2052 = vmatpush1.bf16.msra.mxu0 %v3207_v48  ;;  %2075 = vmatprep.mubr.bf16.mxu0 %v2716_v1 }
0x1c9f   :  { %2053 = vmatprep.subr.bf16.mxu0 %v3213_v55 }
0x1ca2   :  { %2054 = vmatpush1.bf16.msra.mxu0 %v3218_v51 }
0x1ca3   :  { %2055 = vmatprep.subr.bf16.mxu0 %v3227_v54 }
0x1ca6   :  { %2056 = vmatpush1.bf16.msra.mxu0 %v3232_v56 }
0x1ca7   :  { %2057 = vmatprep.subr.bf16.mxu0 %v3237_v47 }
0x1caa   :  { %2058 = vmatpush1.bf16.msra.mxu0 %v3244_v26 }
0x1d5d   :  { %v1901_v21 = vpop.f32.mrf.mxu0 }
0x1d5e   :  { %v1908_v5 = vadd.f32 %v1901_v21, %v1861_v38 }
0x1d5f   :  { %v1903_v31 = vpop.f32.mrf.mxu0 }
0x1d60   :  { %v1909_v0 = vadd.f32 %v1903_v31, %v1862_v39  ;;  %v2460_v17 = vmul.f32 -1.442695, %v1908_v5 }
0x1d61   :  { %v1905_v7 = vpop.f32.mrf.mxu0 }
0x1d62   :  { %v1911_v22 = vmul.f32 2.0, %v1909_v0 }
0x1d63   :  { %v1906_v33 = vpop.f32.mrf.mxu0 }
0x1d64   :  { %v1913_v42 = vsel %vm37_vm3, %v1909_v0, %v1911_v22 }
0x1d65   :  { %v2461_v40 = vmul.f32 -1.442695, %v1913_v42 }
0x1d67   :  { %2676 = vpow2.f32 %v2461_v40 }
0x1d74   :  { %v2677_v44 = vpop.eup %2676 }
0x1d75   :  { %v1921_v13 = vadd.f32 1.0, %v2677_v44 }
0x1d77   :  { %2678 = vrcp.f32 %v1921_v13 }
0x1d78   :  { %2680 = vpow2.f32 %v2460_v17 }
0x1d84   :  { %v2679_v19 = vpop.eup %2678 }
0x1d85   :  { %v1927_v16 = vmul.f32 2.0, %v2679_v19  ;;  %v2681_v9 = vpop.eup %2680 }
0x1d86   :  { %v1920_v39 = vadd.f32 1.0, %v2681_v9 }
0x1d87   :  { %v2463_v38 = vadd.f32 -1.0, %v1927_v16 }
0x1d88   :  { %2682 = vrcp.f32 %v1920_v39 }
0x1d89   :  { %v1931_v29 = vsel %vm37_vm3, %v2679_v19, %v2463_v38 }
0x1d8a   :  { %1934 = vrot.lane.b32.xlu0 %v1931_v29, %s2717_s2 }
0x1d95   :  { %v2683_v49 = vpop.eup %2682 }
0x1d96   :  { %v1932_v20 = vmul.f32 %v2683_v49, %v1854_v2 }
0x1dfc   :  { %v1935_v18 = vpop.permute.xlu0 %1934 }
0x1dfd   :  { %v1937_v14 = vmul.f32 %v2683_v49, %v1935_v18 }
0x1dff   :  { %1939 = vrot.lane.b32.xlu1 %v1937_v14, %s2717_s2 }
0x1e71   :  { %v1940_v59 = vpop.permute.xlu1 %1939 }
0x1e72   :  { %v1942_v46 = vadd.f32 %v1940_v59, %v1932_v20 }
0x1e74   :  { %2684 = vtanh.f32 %v1942_v46 }
0x1e81   :  { %v2685_v61 = vpop.eup %2684 }
0x1e82   :  { %1945 = vrot.lane.b32.xlu0 %v2685_v61, %s2717_s2 }
0x1ef4   :  { %v1946_v12 = vpop.permute.xlu0 %1945 }
0x1ef5   :  { %v1948_v25 = vmul.f32 %v1946_v12, %v1931_v29 }
0x1ef7   :  { %v1951_v35 = vpack.c.bf16 %v1948_v25, %v1948_v25 }
0x1ef9   :  { %2464 = vmatmul.mubr.msk.bf16.vlgmr.msra.gmra.mxu1 %vm252_vm6, %v1951_v35 }
0x1efa   :  { %2140 = vmatpush1.bf16.msra.mxu1 %v3207_v48  ;;  %2163 = vmatprep.mubr.bf16.mxu1 %v2716_v1 }
0x1efb   :  { %2141 = vmatprep.subr.bf16.mxu1 %v3213_v55 }
0x1efe   :  { %2142 = vmatpush1.bf16.msra.mxu1 %v3218_v51 }
0x1eff   :  { %2143 = vmatprep.subr.bf16.mxu1 %v3227_v54 }
0x1f02   :  { %2144 = vmatpush1.bf16.msra.mxu1 %v3232_v56 }
0x1f03   :  { %2145 = vmatprep.subr.bf16.mxu1 %v3237_v47 }
0x1f06   :  { %2146 = vmatpush1.bf16.msra.mxu1 %v3244_v26 }
0x1fb9   :  { %v1989_v6 = vpop.f32.mrf.mxu1 }
0x1fba   :  { %v1996_v48 = vadd.f32 %v1989_v6, %v1949_v37 }
0x1fbb   :  { %v1991_v1 = vpop.f32.mrf.mxu1 }
0x1fbc   :  { %v1997_v55 = vadd.f32 %v1991_v1, %v1950_v62  ;;  %v2465_v58 = vmul.f32 -1.442695, %v1996_v48 }
0x1fbd   :  { %v1993_v51 = vpop.f32.mrf.mxu1 }
0x1fbe   :  { %v1999_v54 = vmul.f32 2.0, %v1997_v55 }
0x1fbf   :  { %v1994_v56 = vpop.f32.mrf.mxu1 }
0x1fc0   :  { %v2001_v47 = vsel %vm37_vm3, %v1997_v55, %v1999_v54 }
0x1fc1   :  { %v2466_v26 = vmul.f32 -1.442695, %v2001_v47 }
0x1fc3   :  { %2686 = vpow2.f32 %v2466_v26 }
0x1fd0   :  { %v2687_v53 = vpop.eup %2686 }
0x1fd1   :  { %v2009_v2 = vadd.f32 1.0, %v2687_v53 }
0x1fd3   :  { %2688 = vrcp.f32 %v2009_v2 }
0x1fd4   :  { %2690 = vpow2.f32 %v2465_v58  ;;  %v2220_v58 = vld [vmem:[%s3588_s7 + $0x38] sm:$0xff] }
0x1fe0   :  { %v2689_v15 = vpop.eup %2688 }
0x1fe1   :  { %v2015_v4 = vmul.f32 2.0, %v2689_v15  ;;  %v2691_v63 = vpop.eup %2690 }
0x1fe2   :  { %v2008_v62 = vadd.f32 1.0, %v2691_v63  ;;  %v2218_v63 = vld [vmem:[%s3588_s7 + $0x28] sm:$0xff] }
0x1fe3   :  { %v2468_v37 = vadd.f32 -1.0, %v2015_v4 }
0x1fe4   :  { %2692 = vrcp.f32 %v2008_v62  ;;  %v2217_v62 = vld [vmem:[%s3588_s7 + $0x20] sm:$0xff] }
0x1fe5   :  { %v2019_v30 = vsel %vm37_vm3, %v2689_v15, %v2468_v37 }
0x1fe6   :  { %2022 = vrot.lane.b32.xlu1 %v2019_v30, %s2717_s2 }
0x1ff1   :  { %v2693_v10 = vpop.eup %2692 }
0x1ff2   :  { %v2020_v21 = vmul.f32 %v2693_v10, %v1942_v46 }
0x2058   :  { %v2023_v27 = vpop.permute.xlu1 %2022 }
0x2059   :  { %v2025_v23 = vmul.f32 %v2693_v10, %v2023_v27  ;;  %v2216_v10 = vld [vmem:[%s3588_s7 + $0x18] sm:$0xff]  ;;  %v2215_v27 = vld [vmem:[%s3588_s7 + $0x10] sm:$0xff] }
0x205b   :  { %2027 = vrot.lane.b32.xlu0 %v2025_v23, %s2717_s2  ;;  %v2214_v23 = vld [vmem:[%s3588_s7 + $0x8] sm:$0xff] }
0x20cd   :  { %v2028_v5 = vpop.permute.xlu0 %2027 }
0x20ce   :  { %v2030_v31 = vadd.f32 %v2028_v5, %v2020_v21 }
0x20d0   :  { %2694 = vtanh.f32 %v2030_v31 }
0x20dd   :  { %v2695_v0 = vpop.eup %2694 }
0x20de   :  { %2033 = vrot.lane.b32.xlu1 %v2695_v0, %s2717_s2  ;;  %v2213_v0 = vld [vmem:[%s3588_s7] sm:$0xff] }
0x2150   :  { %v2034_v7 = vpop.permute.xlu1 %2033 }
0x2151   :  { %v2036_v22 = vmul.f32 %v2034_v7, %v2019_v30  ;;  %v2718_v30 = vmov 0.0  }
0x2152   :  { %2490 = vmatprep.subr.mxu0 %v2718_v30 }
0x2153   :  { %v2039_v33 = vpack.c.bf16 %v2036_v22, %v2036_v22 }
0x2155   :  { %2469 = vmatmul.mubr.msk.bf16.vlgmr.msra.gmra.mxu0 %vm252_vm6, %v2039_v33 }
0x2156   :  { %2491 = vmatpush3.msra.mxu0 %v2220_v58  ;;  %2506 = vmatprep.mubr.msk.f32.mxu0 %vm2719_vm7, %v2718_v30 }
0x2157   :  { %2492 = vmatprep.subr.mxu0 %v2718_v30 }
0x2158   :  { %2493 = vmatpush3.msra.mxu0 %v2219_v32 }
0x2159   :  { %2494 = vmatprep.subr.mxu0 %v2718_v30 }
0x215a   :  { %2495 = vmatpush3.msra.mxu0 %v2218_v63 }
0x215b   :  { %2496 = vmatprep.subr.mxu0 %v2718_v30 }
0x215c   :  { %2497 = vmatpush3.msra.mxu0 %v2217_v62 }
0x215d   :  { %2498 = vmatprep.subr.mxu0 %v2718_v30 }
0x215e   :  { %2499 = vmatpush3.msra.mxu0 %v2216_v10 }
0x215f   :  { %2500 = vmatprep.subr.mxu0 %v2718_v30 }
0x2160   :  { %2501 = vmatpush3.msra.mxu0 %v2215_v27 }
0x2161   :  { %2502 = vmatprep.subr.mxu0 %v2718_v30 }
0x2162   :  { %2503 = vmatpush3.msra.mxu0 %v2214_v23 }
0x2163   :  { %2504 = vmatprep.subr.mxu0 %v2718_v30 }
0x2164   :  { %2505 = vmatpush3.msra.mxu0 %v2213_v0 }
0x2215   :  { %v2077_v42 = vpop.f32.mrf.mxu0 }
0x2216   :  { %v2084_v40 = vadd.f32 %v2077_v42, %v2037_v3  ;;  %v2479_v42 = vld [vmem:[%s3589_s8] ss:$0 sm:$0xff] }
0x2217   :  { %v2079_v44 = vpop.f32.mrf.mxu0 }
0x2218   :  { %v2085_v13 = vadd.f32 %v2079_v44, %v2038_v24  ;;  %v2470_v34 = vmul.f32 -1.442695, %v2084_v40 }
0x2219   :  { %v2081_v19 = vpop.f32.mrf.mxu0 }
0x221a   :  { %v2087_v16 = vmul.f32 2.0, %v2085_v13 }
0x221b   :  { %v2082_v38 = vpop.f32.mrf.mxu0 }
0x221c   :  { %v2089_v29 = vsel %vm37_vm3, %v2085_v13, %v2087_v16 }
0x221d   :  { %v2471_v17 = vmul.f32 -1.442695, %v2089_v29 }
0x221f   :  { %2696 = vpow2.f32 %v2471_v17 }
0x222c   :  { %v2697_v9 = vpop.eup %2696 }
0x222d   :  { %v2097_v39 = vadd.f32 1.0, %v2697_v9 }
0x222f   :  { %2698 = vrcp.f32 %v2097_v39 }
0x2230   :  { %2700 = vpow2.f32 %v2470_v34 }
0x223c   :  { %v2699_v60 = vpop.eup %2698 }
0x223d   :  { %v2103_v50 = vmul.f32 2.0, %v2699_v60  ;;  %v2701_v57 = vpop.eup %2700 }
0x223e   :  { %v2096_v24 = vadd.f32 1.0, %v2701_v57 }
0x223f   :  { %v2473_v3 = vadd.f32 -1.0, %v2103_v50 }
0x2240   :  { %2702 = vrcp.f32 %v2096_v24 }
0x2241   :  { %v2107_v49 = vsel %vm37_vm3, %v2699_v60, %v2473_v3 }
0x2242   :  { %2110 = vrot.lane.b32.xlu0 %v2107_v49, %s2717_s2 }
0x224d   :  { %v2703_v18 = vpop.eup %2702 }
0x224e   :  { %v2108_v59 = vmul.f32 %v2703_v18, %v2030_v31 }
0x22b4   :  { %v2111_v14 = vpop.permute.xlu0 %2110 }
0x22b5   :  { %v2113_v20 = vmul.f32 %v2703_v18, %v2111_v14 }
0x22b7   :  { %2115 = vrot.lane.b32.xlu1 %v2113_v20, %s2717_s2 }
0x2329   :  { %v2116_v46 = vpop.permute.xlu1 %2115 }
0x232a   :  { %v2118_v61 = vadd.f32 %v2116_v46, %v2108_v59 }
0x232c   :  { %2704 = vtanh.f32 %v2118_v61 }
0x2339   :  { %v2705_v12 = vpop.eup %2704 }
0x233a   :  { %2121 = vrot.lane.b32.xlu0 %v2705_v12, %s2717_s2 }
0x23ac   :  { %v2122_v25 = vpop.permute.xlu0 %2121 }
0x23ad   :  { %v2124_v35 = vmul.f32 %v2122_v25, %v2107_v49 }
0x23af   :  { %v2127_v6 = vpack.c.bf16 %v2124_v35, %v2124_v35 }
0x23b1   :  { %2474 = vmatmul.mubr.msk.bf16.vlgmr.msra.gmra.mxu1 %vm252_vm6, %v2127_v6 }
0x2471   :  { %v2165_v48 = vpop.f32.mrf.mxu1 }
0x2472   :  { %v2172_v1 = vadd.f32 %v2165_v48, %v2125_v8 }
0x2473   :  { %v2167_v55 = vpop.f32.mrf.mxu1 }
0x2474   :  { %v2173_v51 = vadd.f32 %v2167_v55, %v2126_v11  ;;  %v2475_v28 = vmul.f32 -1.442695, %v2172_v1 }
0x2475   :  { %v2169_v54 = vpop.f32.mrf.mxu1 }
0x2476   :  { %v2175_v56 = vmul.f32 2.0, %v2173_v51 }
0x2477   :  { %v2170_v47 = vpop.f32.mrf.mxu1 }
0x2478   :  { %v2177_v26 = vsel %vm37_vm3, %v2173_v51, %v2175_v56 }
0x2479   :  { %v2476_v53 = vmul.f32 -1.442695, %v2177_v26 }
0x247b   :  { %2706 = vpow2.f32 %v2476_v53 }
0x2488   :  { %v2707_v41 = vpop.eup %2706 }
0x2489   :  { %v2185_v2 = vadd.f32 1.0, %v2707_v41 }
0x248b   :  { %2708 = vrcp.f32 %v2185_v2 }
0x248c   :  { %2710 = vpow2.f32 %v2475_v28 }
0x2498   :  { %v2709_v43 = vpop.eup %2708 }
0x2499   :  { %v2191_v36 = vmul.f32 2.0, %v2709_v43  ;;  %v2711_v52 = vpop.eup %2710 }
0x249a   :  { %v2184_v11 = vadd.f32 1.0, %v2711_v52 }
0x249b   :  { %v2478_v8 = vadd.f32 -1.0, %v2191_v36 }
0x249c   :  { %2712 = vrcp.f32 %v2184_v11 }
0x249d   :  { %v2195_v45 = vsel %vm37_vm3, %v2709_v43, %v2478_v8 }
0x249e   :  { %2198 = vrot.lane.b32.xlu1 %v2195_v45, %s2717_s2 }
0x24a9   :  { %v2713_v15 = vpop.eup %2712 }
0x24aa   :  { %v2196_v21 = vmul.f32 %v2713_v15, %v2118_v61 }
0x2510   :  { %v2199_v4 = vpop.permute.xlu1 %2198 }
0x2511   :  { %v2201_v37 = vmul.f32 %v2713_v15, %v2199_v4 }
0x2513   :  { %2203 = vrot.lane.b32.xlu0 %v2201_v37, %s2717_s2 }
0x2585   :  { %v2204_v5 = vpop.permute.xlu0 %2203 }
0x2586   :  { %v2206_v31 = vadd.f32 %v2204_v5, %v2196_v21 }
0x2588   :  { %2714 = vtanh.f32 %v2206_v31 }
0x2595   :  { %v2715_v7 = vpop.eup %2714 }
0x2596   :  { %2209 = vrot.lane.b32.xlu1 %v2715_v7, %s2717_s2 }
0x2608   :  { %v2210_v22 = vpop.permute.xlu1 %2209 }
0x2609   :  { %v2212_v33 = vmul.f32 %v2210_v22, %v2195_v45 }
0x260b   :  { %2507 = vmatmul.mubr.msk.f32.vlgmr.msra.gmra.mxu0 %vm252_vm6, %v2212_v33 }
0x26cb   :  { %v2297_v40 = vpop.f32.mrf.mxu0 }
0x26cc   :  { %v2298_v44 = vadd.f32 %v2479_v42, %v2297_v40 }
0x26cd   :  { %v2508_v13 = vpop.f32.mrf.mxu0 }
0x26ce   :  { %2302 = vst.msk [vmem:[%s3590_s9] sm:$0xff] %vm2301_vm8, %v2298_v44 }

</bundles_post_ra>
